<compile_context>
chip_gen: v6e
topology: v6e:2x2x1
jax: 0.10.0
libtpu: 0.0.40
codegen_flags: <defaults>
</compile_context>

<pallas_src>
import functools
import numpy as np
import jax
import jax.numpy as jnp
from jax import lax
from jax.experimental import pallas as pl
from jax.experimental.pallas import tpu as pltpu


# ---------------------------------------------------------------------------
# Host-side operator construction.
# ---------------------------------------------------------------------------
def _interp_matrix(out_size, in_size):
    A = np.zeros((out_size, in_size), np.float32)
    if out_size == 1 or in_size == 1:
        A[:, 0] = 1.0
        return A
    scale = (in_size - 1) / (out_size - 1)
    for i in range(out_size):
        src = i * scale
        lo = int(np.floor(src))
        hi = min(lo + 1, in_size - 1)
        frac = src - lo
        A[i, lo] += 1.0 - frac
        A[i, hi] += frac
    return A


def _padded_interp_operators(H1, W1, H, W):
    """Bilinear x2 (align_corners=True) row/col operators with F.pad folded in."""
    Ho, Wo = 2 * H1, 2 * W1
    diffY, diffX = H - Ho, W - Wo
    assert diffY >= 0 and diffX >= 0   # TODO(synk): center-crop branch unsupported
    Ah = np.zeros((H, H1), np.float32)
    Ah[diffY // 2: diffY // 2 + Ho, :] = _interp_matrix(Ho, H1)
    Aw = np.zeros((W, W1), np.float32)
    Aw[diffX // 2: diffX // 2 + Wo, :] = _interp_matrix(Wo, W1)
    return Ah, Aw


# ---------------------------------------------------------------------------
# Fused kernel: one batch element per grid step.
# Layout inside the kernel: (channels on sublanes, flat padded spatial on lanes).
# Padded plane: Hp = H+2, Wp = W+2, Sp = Hp*Wp, flat index p = yy*Wp + xx.
# ---------------------------------------------------------------------------
def _up_doubleconv_kernel(x2_ref, x1_ref, ahp_ref, awpt_ref,
                          w1_ref, s1_ref, b1_ref,
                          w2_ref, s2_ref, b2_ref, mask_ref, o_ref, *,
                          H, W, H1, W1, C1, Cmid, Cout):
    Hp, Wp = H + 2, W + 2
    Sp = Hp * Wp
    MARG = Wp + 1            # margin so every 3x3 tap shift is a static, in-bounds slice

    # ---- separable bilinear x2 upsample of x1 (F.pad + conv halo folded into
    #      the operators); two channel-batched MXU matmuls, f32 (tiny). -------
    x1 = x1_ref[0]                                               # (C1, H1, W1)
    ahp_b = jnp.broadcast_to(ahp_ref[...], (C1, Hp, H1))
    t = lax.dot_general(ahp_b, x1, (((2,), (1,)), ((0,), (0,))),
                        preferred_element_type=jnp.float32)      # (C1, Hp, W1)
    awpt_b = jnp.broadcast_to(awpt_ref[...], (C1, W1, Wp))
    u = lax.dot_general(t, awpt_b, (((2,), (1,)), ((0,), (0,))),
                        preferred_element_type=jnp.float32)      # (C1, Hp, Wp)
    # Flatten the padded plane onto the lane axis (row-major): (C1, Hp, Wp) -> (C1, Sp).
    # TODO(synk): for large Hp use strided DMA / row-block tiling instead of a concat.
    x1u = jnp.concatenate([u[:, r, :] for r in range(Hp)], axis=1)

    # ---- channel concat [x2, x1u]  (torch.cat dim=1 order) ------------------
    x = jnp.concatenate([x2_ref[0], x1u], axis=0)                # (Cin, Sp) f32
    mask = mask_ref[...]                                         # (1, Sp) f32

    def conv3x3_bn_relu(inp_f32, w_ref, s_ref, b_ref, cout):
        """3x3 conv (padding=1) as 9 shifted (cout,cin)x(cin,Sp) MXU dots.
        bf16 operands / f32 accumulate; folded BN + ReLU; halo ring re-zeroed."""
        cin = inp_f32.shape[0]
        inp = inp_f32.astype(jnp.bfloat16)
        zpad = jnp.zeros((cin, MARG), jnp.bfloat16)
        buf = jnp.concatenate([zpad, inp, zpad], axis=1)         # (cin, Sp + 2*MARG)
        acc = jnp.zeros((cout, Sp), jnp.float32)
        for tap in range(9):
            dy, dx = tap // 3, tap % 3
            off = (dy - 1) * Wp + (dx - 1)
            win = buf[:, MARG + off: MARG + off + Sp]            # (cin, Sp) bf16
            acc = acc + jnp.dot(w_ref[tap], win,
                                preferred_element_type=jnp.float32)
        y = jnp.maximum(acc * s_ref[...] + b_ref[...], 0.0)      # (cout, Sp) f32
        return y * mask                                          # zero the halo ring

    y1 = conv3x3_bn_relu(x, w1_ref, s1_ref, b1_ref, Cmid)        # never leaves VMEM
    y2 = conv3x3_bn_relu(y1, w2_ref, s2_ref, b2_ref, Cout)       # (Cout, Sp)

    # ---- lane-dense channels-first store of rows 1..H of the padded grid;
    #      the host trims the two width-halo columns with a free reshape/slice.
    o_ref[0] = y2[:, Wp: Wp + H * Wp]


# ---------------------------------------------------------------------------
# Up.forward wrapper (NCHW in / NCHW out).
# ---------------------------------------------------------------------------
def up_forward(x1_nchw, x2_nchw, params):
    x1_nchw = x1_nchw.astype(jnp.float32)
    x2_nchw = x2_nchw.astype(jnp.float32)
    B, C1, H1, W1 = x1_nchw.shape
    B2, C2, H, W = x2_nchw.shape
    assert B == B2
    Cin = C1 + C2
    Cmid = params["w1"].shape[-1]
    Cout = params["w2"].shape[-1]
    Hp, Wp = H + 2, W + 2
    Sp = Hp * Wp

    # Separable upsample operators; F.pad offsets + conv halo (zero first/last
    # row/col) folded in, so the upsampled channels arrive already halo-zeroed.
    Ah, Aw = _padded_interp_operators(H1, W1, H, W)
    Ahp = np.zeros((Hp, H1), np.float32); Ahp[1:H + 1] = Ah
    Awp = np.zeros((Wp, W1), np.float32); Awp[1:W + 1] = Aw
    ahp = jnp.asarray(Ahp)                  # (Hp, H1)
    awpt = jnp.asarray(Awp.T)               # (W1, Wp)

    # x2: zero halo + flatten on the host (pad + reshape only, no transpose).
    x2p = jnp.pad(x2_nchw, ((0, 0), (0, 0), (1, 1), (1, 1))).reshape(B, C2, Sp)

    # Conv weights per tap in (Cout, Cin) orientation, bf16 MXU operands.
    w1t = jnp.transpose(params["w1"], (0, 1, 3, 2)).reshape(9, Cmid, Cin).astype(jnp.bfloat16)
    w2t = jnp.transpose(params["w2"], (0, 1, 3, 2)).reshape(9, Cout, Cmid).astype(jnp.bfloat16)
    s1 = params["scale1"].reshape(Cmid, 1).astype(jnp.float32)
    b1 = params["bias1"].reshape(Cmid, 1).astype(jnp.float32)
    s2 = params["scale2"].reshape(Cout, 1).astype(jnp.float32)
    b2 = params["bias2"].reshape(Cout, 1).astype(jnp.float32)

    # Interior mask: re-zeroes the conv halo ring between / after the two convs.
    m2d = np.zeros((Hp, Wp), np.float32)
    m2d[1:H + 1, 1:W + 1] = 1.0
    mask = jnp.asarray(m2d.reshape(1, Sp))

    kern = functools.partial(_up_doubleconv_kernel, H=H, W=W, H1=H1, W1=W1,
                             C1=C1, Cmid=Cmid, Cout=Cout)
    # TODO(synk): mark the grid-invariant operands single-buffered
    #             (pipeline_mode=pl.Buffered(1)) once that path is exercised.
    out = pl.pallas_call(
        kern,
        out_shape=jax.ShapeDtypeStruct((B, Cout, H * Wp), jnp.float32),
        grid=(B,),
        in_specs=[
            pl.BlockSpec((1, C2, Sp), lambda b: (b, 0, 0)),
            pl.BlockSpec((1, C1, H1, W1), lambda b: (b, 0, 0, 0)),
            pl.BlockSpec((Hp, H1), lambda b: (0, 0)),
            pl.BlockSpec((W1, Wp), lambda b: (0, 0)),
            pl.BlockSpec((9, Cmid, Cin), lambda b: (0, 0, 0)),
            pl.BlockSpec((Cmid, 1), lambda b: (0, 0)),
            pl.BlockSpec((Cmid, 1), lambda b: (0, 0)),
            pl.BlockSpec((9, Cout, Cmid), lambda b: (0, 0, 0)),
            pl.BlockSpec((Cout, 1), lambda b: (0, 0)),
            pl.BlockSpec((Cout, 1), lambda b: (0, 0)),
            pl.BlockSpec((1, Sp), lambda b: (0, 0)),
        ],
        out_specs=pl.BlockSpec((1, Cout, H * Wp), lambda b: (b, 0, 0)),
        compiler_params=pltpu.CompilerParams(
            dimension_semantics=("parallel",),
            vmem_limit_bytes=32 * 1024 * 1024),
    )(x2p, x1_nchw, ahp, awpt, w1t, s1, b1, w2t, s2, b2, mask)

    # Trim the width-halo columns (free host-side reshape + slice) -> NCHW.
    return out.reshape(B, Cout, H, Wp)[:, :, :, 1:W + 1]


# ---------------------------------------------------------------------------
# Plain-JAX reference (independent conv path) for correctness check.
# ---------------------------------------------------------------------------
def up_forward_reference(x1, x2, params):
    B, C1, H1, W1 = x1.shape
    _, C2, H, W = x2.shape
    Ah, Aw = _padded_interp_operators(H1, W1, H, W)
    x1u = jnp.einsum("oh,nchw,pw->ncop", jnp.asarray(Ah), x1, jnp.asarray(Aw))
    x = jnp.concatenate([x2, x1u], axis=1)

    def cbr(x, w_hwio, scale, bias):
        y = lax.conv_general_dilated(x, w_hwio, (1, 1), "SAME",
                                     dimension_numbers=("NCHW", "HWIO", "NCHW"))
        y = y * scale[None, :, None, None] + bias[None, :, None, None]
        return jnp.maximum(y, 0.0)

    y = cbr(x, params["w1"], params["scale1"], params["bias1"])
    return cbr(y, params["w2"], params["scale2"], params["bias2"])


# ---------------------------------------------------------------------------
# Deterministic parameters (inference-mode BN folded into scale/bias).
# ---------------------------------------------------------------------------
def make_params(key, in_channels, out_channels):
    mid = in_channels // 2
    ks = jax.random.split(key, 12)
    eps = 1e-5

    def bn_fold(conv_bias, kgamma, kbeta, kmean, kvar, c):
        gamma = 1.0 + 0.1 * jax.random.normal(kgamma, (c,), jnp.float32)
        beta = 0.1 * jax.random.normal(kbeta, (c,), jnp.float32)
        rmean = 0.1 * jax.random.normal(kmean, (c,), jnp.float32)
        rvar = jnp.abs(1.0 + 0.1 * jax.random.normal(kvar, (c,), jnp.float32))
        scale = gamma / jnp.sqrt(rvar + eps)
        bias = beta + scale * (conv_bias - rmean)
        return scale, bias

    w1 = 0.1 * jax.random.normal(ks[0], (3, 3, in_channels, mid), jnp.float32)
    b1 = 0.1 * jax.random.normal(ks[1], (mid,), jnp.float32)
    scale1, bias1 = bn_fold(b1, ks[2], ks[3], ks[4], ks[5], mid)

    w2 = 0.1 * jax.random.normal(ks[6], (3, 3, mid, out_channels), jnp.float32)
    b2 = 0.1 * jax.random.normal(ks[7], (out_channels,), jnp.float32)
    scale2, bias2 = bn_fold(b2, ks[8], ks[9], ks[10], ks[11], out_channels)

    return {"w1": w1, "scale1": scale1, "bias1": bias1,
            "w2": w2, "scale2": scale2, "bias2": bias2}


if __name__ == "__main__":
    key = jax.random.PRNGKey(0)
    k1, k2, kp = jax.random.split(key, 3)

    in_channels, out_channels = 8, 4      # Up(8, 4, bilinear=True, batch_norm=True)
    B, H, W = 2, 8, 16                    # x1 is the deeper (half-res) feature map
    x1 = jax.random.normal(k1, (B, in_channels // 2, H // 2, W // 2), jnp.float32)
    x2 = jax.random.normal(k2, (B, in_channels // 2, H, W), jnp.float32)
    params = make_params(kp, in_channels, out_channels)

    out = jax.block_until_ready(up_forward(x1, x2, params))
    ref = jax.block_until_ready(up_forward_reference(x1, x2, params))

    assert out.shape == (B, out_channels, H, W), out.shape
    # bf16 conv operands (per perf review) with f32 accumulation -> loosened tolerance.
    assert np.allclose(np.asarray(out), np.asarray(ref), atol=5e-2, rtol=5e-2), \
        float(np.max(np.abs(np.asarray(out) - np.asarray(ref))))

    print("KERNEL_OK")
</pallas_src>

<mosaic_0001>
module attributes {stable_mosaic.version = 11 : i64} {
  func.func @_up_doubleconv_kernel(%arg0: i32, %arg1: memref<1x4x180xf32, #tpu.memory_space<vmem>>, %arg2: memref<1x4x4x8xf32, #tpu.memory_space<vmem>>, %arg3: memref<10x4xf32, #tpu.memory_space<vmem>>, %arg4: memref<8x18xf32, #tpu.memory_space<vmem>>, %arg5: memref<9x4x8xbf16, #tpu.memory_space<vmem>>, %arg6: memref<4x1xf32, #tpu.memory_space<vmem>>, %arg7: memref<4x1xf32, #tpu.memory_space<vmem>>, %arg8: memref<9x4x4xbf16, #tpu.memory_space<vmem>>, %arg9: memref<4x1xf32, #tpu.memory_space<vmem>>, %arg10: memref<4x1xf32, #tpu.memory_space<vmem>>, %arg11: memref<1x180xf32, #tpu.memory_space<vmem>>, %arg12: memref<1x4x144xf32, #tpu.memory_space<vmem>>) attributes {dimension_semantics = [#tpu.dimension_semantics<parallel>], iteration_bounds = array<i64: 2>, scalar_prefetch = 0 : i64, scratch_operands = 0 : i64, tpu.core_type = #tpu.core_type<tc>, window_params = [{transform_indices = @transform_0, window_bounds = array<i64: 1, 4, 180>}, {transform_indices = @transform_1, window_bounds = array<i64: 1, 4, 4, 8>}, {pipeline_mode = #tpu.pipeline_mode<synchronous>, transform_indices = @transform_2, window_bounds = array<i64: 10, 4>}, {pipeline_mode = #tpu.pipeline_mode<synchronous>, transform_indices = @transform_3, window_bounds = array<i64: 8, 18>}, {pipeline_mode = #tpu.pipeline_mode<synchronous>, transform_indices = @transform_4, window_bounds = array<i64: 9, 4, 8>}, {pipeline_mode = #tpu.pipeline_mode<synchronous>, transform_indices = @transform_5, window_bounds = array<i64: 4, 1>}, {pipeline_mode = #tpu.pipeline_mode<synchronous>, transform_indices = @transform_6, window_bounds = array<i64: 4, 1>}, {pipeline_mode = #tpu.pipeline_mode<synchronous>, transform_indices = @transform_7, window_bounds = array<i64: 9, 4, 4>}, {pipeline_mode = #tpu.pipeline_mode<synchronous>, transform_indices = @transform_8, window_bounds = array<i64: 4, 1>}, {pipeline_mode = #tpu.pipeline_mode<synchronous>, transform_indices = @transform_9, window_bounds = array<i64: 4, 1>}, {pipeline_mode = #tpu.pipeline_mode<synchronous>, transform_indices = @transform_10, window_bounds = array<i64: 1, 180>}, {transform_indices = @transform_11, window_bounds = array<i64: 1, 4, 144>}]} {
    %c0 = arith.constant 0 : index
    %c0_0 = arith.constant 0 : index
    %c0_1 = arith.constant 0 : index
    %c0_2 = arith.constant 0 : index
    %0 = vector.load %arg2[%c0, %c0_0, %c0_1, %c0_2] : memref<1x4x4x8xf32, #tpu.memory_space<vmem>>, vector<1x4x4x8xf32>
    %1 = vector.shape_cast %0 : vector<1x4x4x8xf32> to vector<4x4x8xf32>
    %c0_3 = arith.constant 0 : index
    %c0_4 = arith.constant 0 : index
    %2 = vector.load %arg3[%c0_3, %c0_4] : memref<10x4xf32, #tpu.memory_space<vmem>>, vector<10x4xf32>
    %3 = vector.shape_cast %2 : vector<10x4xf32> to vector<1x10x4xf32>
    %4 = vector.broadcast %3 : vector<1x10x4xf32> to vector<4x10x4xf32>
    %cst = arith.constant dense<0.000000e+00> : vector<4x10x8xf32>
    %5 = tpu.matmul %4, %1, %cst {dimension_numbers = #tpu.dot_dimension_numbers<[2], [1], [1], [2], [0, 0, 0, 1, 1, 2], [0], [0]>} : vector<4x10x4xf32>, vector<4x4x8xf32>, vector<4x10x8xf32> -> vector<4x10x8xf32>
    %c0_5 = arith.constant 0 : index
    %c0_6 = arith.constant 0 : index
    %6 = vector.load %arg4[%c0_5, %c0_6] : memref<8x18xf32, #tpu.memory_space<vmem>>, vector<8x18xf32>
    %7 = vector.shape_cast %6 : vector<8x18xf32> to vector<1x8x18xf32>
    %8 = vector.broadcast %7 : vector<1x8x18xf32> to vector<4x8x18xf32>
    %cst_7 = arith.constant dense<0.000000e+00> : vector<4x10x18xf32>
    %9 = tpu.matmul %5, %8, %cst_7 {dimension_numbers = #tpu.dot_dimension_numbers<[2], [1], [1], [2], [0, 0, 0, 1, 1, 2], [0], [0]>} : vector<4x10x8xf32>, vector<4x8x18xf32>, vector<4x10x18xf32> -> vector<4x10x18xf32>
    %10 = vector.extract_strided_slice %9 {offsets = [0, 0, 0], sizes = [4, 1, 18], strides = [1, 1, 1]} : vector<4x10x18xf32> to vector<4x1x18xf32>
    %11 = vector.shape_cast %10 : vector<4x1x18xf32> to vector<4x18xf32>
    %12 = vector.extract_strided_slice %9 {offsets = [0, 1, 0], sizes = [4, 1, 18], strides = [1, 1, 1]} : vector<4x10x18xf32> to vector<4x1x18xf32>
    %13 = vector.shape_cast %12 : vector<4x1x18xf32> to vector<4x18xf32>
    %14 = vector.extract_strided_slice %9 {offsets = [0, 2, 0], sizes = [4, 1, 18], strides = [1, 1, 1]} : vector<4x10x18xf32> to vector<4x1x18xf32>
    %15 = vector.shape_cast %14 : vector<4x1x18xf32> to vector<4x18xf32>
    %16 = vector.extract_strided_slice %9 {offsets = [0, 3, 0], sizes = [4, 1, 18], strides = [1, 1, 1]} : vector<4x10x18xf32> to vector<4x1x18xf32>
    %17 = vector.shape_cast %16 : vector<4x1x18xf32> to vector<4x18xf32>
    %18 = vector.extract_strided_slice %9 {offsets = [0, 4, 0], sizes = [4, 1, 18], strides = [1, 1, 1]} : vector<4x10x18xf32> to vector<4x1x18xf32>
    %19 = vector.shape_cast %18 : vector<4x1x18xf32> to vector<4x18xf32>
    %20 = vector.extract_strided_slice %9 {offsets = [0, 5, 0], sizes = [4, 1, 18], strides = [1, 1, 1]} : vector<4x10x18xf32> to vector<4x1x18xf32>
    %21 = vector.shape_cast %20 : vector<4x1x18xf32> to vector<4x18xf32>
    %22 = vector.extract_strided_slice %9 {offsets = [0, 6, 0], sizes = [4, 1, 18], strides = [1, 1, 1]} : vector<4x10x18xf32> to vector<4x1x18xf32>
    %23 = vector.shape_cast %22 : vector<4x1x18xf32> to vector<4x18xf32>
    %24 = vector.extract_strided_slice %9 {offsets = [0, 7, 0], sizes = [4, 1, 18], strides = [1, 1, 1]} : vector<4x10x18xf32> to vector<4x1x18xf32>
    %25 = vector.shape_cast %24 : vector<4x1x18xf32> to vector<4x18xf32>
    %26 = vector.extract_strided_slice %9 {offsets = [0, 8, 0], sizes = [4, 1, 18], strides = [1, 1, 1]} : vector<4x10x18xf32> to vector<4x1x18xf32>
    %27 = vector.shape_cast %26 : vector<4x1x18xf32> to vector<4x18xf32>
    %28 = vector.extract_strided_slice %9 {offsets = [0, 9, 0], sizes = [4, 1, 18], strides = [1, 1, 1]} : vector<4x10x18xf32> to vector<4x1x18xf32>
    %29 = vector.shape_cast %28 : vector<4x1x18xf32> to vector<4x18xf32>
    %30 = tpu.concatenate %11, %13, %15, %17, %19, %21, %23, %25, %27, %29 in 1 : vector<4x18xf32>, vector<4x18xf32>, vector<4x18xf32>, vector<4x18xf32>, vector<4x18xf32>, vector<4x18xf32>, vector<4x18xf32>, vector<4x18xf32>, vector<4x18xf32>, vector<4x18xf32> -> vector<4x180xf32>
    %c0_8 = arith.constant 0 : index
    %c0_9 = arith.constant 0 : index
    %c0_10 = arith.constant 0 : index
    %31 = vector.load %arg1[%c0_8, %c0_9, %c0_10] : memref<1x4x180xf32, #tpu.memory_space<vmem>>, vector<1x4x180xf32>
    %32 = vector.shape_cast %31 : vector<1x4x180xf32> to vector<4x180xf32>
    %33 = tpu.concatenate %32, %30 in 0 : vector<4x180xf32>, vector<4x180xf32> -> vector<8x180xf32>
    %c0_11 = arith.constant 0 : index
    %c0_12 = arith.constant 0 : index
    %34 = vector.load %arg11[%c0_11, %c0_12] : memref<1x180xf32, #tpu.memory_space<vmem>>, vector<1x180xf32>
    %35 = arith.truncf %33 : vector<8x180xf32> to vector<8x180xbf16>
    %cst_13 = arith.constant 0.000000e+00 : bf16
    %36 = vector.broadcast %cst_13 : bf16 to vector<8x19xbf16>
    %37 = tpu.concatenate %36, %35, %36 in 1 : vector<8x19xbf16>, vector<8x180xbf16>, vector<8x19xbf16> -> vector<8x218xbf16>
    %cst_14 = arith.constant 0.000000e+00 : f32
    %38 = vector.broadcast %cst_14 : f32 to vector<4x180xf32>
    %39 = vector.extract_strided_slice %37 {offsets = [0, 0], sizes = [8, 180], strides = [1, 1]} : vector<8x218xbf16> to vector<8x180xbf16>
    %c0_15 = arith.constant 0 : index
    %c0_16 = arith.constant 0 : index
    %c0_17 = arith.constant 0 : index
    %40 = vector.load %arg5[%c0_15, %c0_16, %c0_17] : memref<9x4x8xbf16, #tpu.memory_space<vmem>>, vector<1x4x8xbf16>
    %41 = vector.shape_cast %40 : vector<1x4x8xbf16> to vector<4x8xbf16>
    %cst_18 = arith.constant dense<0.000000e+00> : vector<4x180xf32>
    %42 = tpu.matmul %41, %39, %cst_18 {dimension_numbers = #tpu.dot_dimension_numbers<[1], [0], [0], [1], [0, 0, 1, 1], [], []>} : vector<4x8xbf16>, vector<8x180xbf16>, vector<4x180xf32> -> vector<4x180xf32>
    %43 = arith.addf %38, %42 : vector<4x180xf32>
    %44 = vector.extract_strided_slice %37 {offsets = [0, 1], sizes = [8, 180], strides = [1, 1]} : vector<8x218xbf16> to vector<8x180xbf16>
    %c1 = arith.constant 1 : index
    %c0_19 = arith.constant 0 : index
    %c0_20 = arith.constant 0 : index
    %45 = vector.load %arg5[%c1, %c0_19, %c0_20] : memref<9x4x8xbf16, #tpu.memory_space<vmem>>, vector<1x4x8xbf16>
    %46 = vector.shape_cast %45 : vector<1x4x8xbf16> to vector<4x8xbf16>
    %cst_21 = arith.constant dense<0.000000e+00> : vector<4x180xf32>
    %47 = tpu.matmul %46, %44, %cst_21 {dimension_numbers = #tpu.dot_dimension_numbers<[1], [0], [0], [1], [0, 0, 1, 1], [], []>} : vector<4x8xbf16>, vector<8x180xbf16>, vector<4x180xf32> -> vector<4x180xf32>
    %48 = arith.addf %43, %47 : vector<4x180xf32>
    %49 = vector.extract_strided_slice %37 {offsets = [0, 2], sizes = [8, 180], strides = [1, 1]} : vector<8x218xbf16> to vector<8x180xbf16>
    %c2 = arith.constant 2 : index
    %c0_22 = arith.constant 0 : index
    %c0_23 = arith.constant 0 : index
    %50 = vector.load %arg5[%c2, %c0_22, %c0_23] : memref<9x4x8xbf16, #tpu.memory_space<vmem>>, vector<1x4x8xbf16>
    %51 = vector.shape_cast %50 : vector<1x4x8xbf16> to vector<4x8xbf16>
    %cst_24 = arith.constant dense<0.000000e+00> : vector<4x180xf32>
    %52 = tpu.matmul %51, %49, %cst_24 {dimension_numbers = #tpu.dot_dimension_numbers<[1], [0], [0], [1], [0, 0, 1, 1], [], []>} : vector<4x8xbf16>, vector<8x180xbf16>, vector<4x180xf32> -> vector<4x180xf32>
    %53 = arith.addf %48, %52 : vector<4x180xf32>
    %54 = vector.extract_strided_slice %37 {offsets = [0, 18], sizes = [8, 180], strides = [1, 1]} : vector<8x218xbf16> to vector<8x180xbf16>
    %c3 = arith.constant 3 : index
    %c0_25 = arith.constant 0 : index
    %c0_26 = arith.constant 0 : index
    %55 = vector.load %arg5[%c3, %c0_25, %c0_26] : memref<9x4x8xbf16, #tpu.memory_space<vmem>>, vector<1x4x8xbf16>
    %56 = vector.shape_cast %55 : vector<1x4x8xbf16> to vector<4x8xbf16>
    %cst_27 = arith.constant dense<0.000000e+00> : vector<4x180xf32>
    %57 = tpu.matmul %56, %54, %cst_27 {dimension_numbers = #tpu.dot_dimension_numbers<[1], [0], [0], [1], [0, 0, 1, 1], [], []>} : vector<4x8xbf16>, vector<8x180xbf16>, vector<4x180xf32> -> vector<4x180xf32>
    %58 = arith.addf %53, %57 : vector<4x180xf32>
    %59 = vector.extract_strided_slice %37 {offsets = [0, 19], sizes = [8, 180], strides = [1, 1]} : vector<8x218xbf16> to vector<8x180xbf16>
    %c4 = arith.constant 4 : index
    %c0_28 = arith.constant 0 : index
    %c0_29 = arith.constant 0 : index
    %60 = vector.load %arg5[%c4, %c0_28, %c0_29] : memref<9x4x8xbf16, #tpu.memory_space<vmem>>, vector<1x4x8xbf16>
    %61 = vector.shape_cast %60 : vector<1x4x8xbf16> to vector<4x8xbf16>
    %cst_30 = arith.constant dense<0.000000e+00> : vector<4x180xf32>
    %62 = tpu.matmul %61, %59, %cst_30 {dimension_numbers = #tpu.dot_dimension_numbers<[1], [0], [0], [1], [0, 0, 1, 1], [], []>} : vector<4x8xbf16>, vector<8x180xbf16>, vector<4x180xf32> -> vector<4x180xf32>
    %63 = arith.addf %58, %62 : vector<4x180xf32>
    %64 = vector.extract_strided_slice %37 {offsets = [0, 20], sizes = [8, 180], strides = [1, 1]} : vector<8x218xbf16> to vector<8x180xbf16>
    %c5 = arith.constant 5 : index
    %c0_31 = arith.constant 0 : index
    %c0_32 = arith.constant 0 : index
    %65 = vector.load %arg5[%c5, %c0_31, %c0_32] : memref<9x4x8xbf16, #tpu.memory_space<vmem>>, vector<1x4x8xbf16>
    %66 = vector.shape_cast %65 : vector<1x4x8xbf16> to vector<4x8xbf16>
    %cst_33 = arith.constant dense<0.000000e+00> : vector<4x180xf32>
    %67 = tpu.matmul %66, %64, %cst_33 {dimension_numbers = #tpu.dot_dimension_numbers<[1], [0], [0], [1], [0, 0, 1, 1], [], []>} : vector<4x8xbf16>, vector<8x180xbf16>, vector<4x180xf32> -> vector<4x180xf32>
    %68 = arith.addf %63, %67 : vector<4x180xf32>
    %69 = vector.extract_strided_slice %37 {offsets = [0, 36], sizes = [8, 180], strides = [1, 1]} : vector<8x218xbf16> to vector<8x180xbf16>
    %c6 = arith.constant 6 : index
    %c0_34 = arith.constant 0 : index
    %c0_35 = arith.constant 0 : index
    %70 = vector.load %arg5[%c6, %c0_34, %c0_35] : memref<9x4x8xbf16, #tpu.memory_space<vmem>>, vector<1x4x8xbf16>
    %71 = vector.shape_cast %70 : vector<1x4x8xbf16> to vector<4x8xbf16>
    %cst_36 = arith.constant dense<0.000000e+00> : vector<4x180xf32>
    %72 = tpu.matmul %71, %69, %cst_36 {dimension_numbers = #tpu.dot_dimension_numbers<[1], [0], [0], [1], [0, 0, 1, 1], [], []>} : vector<4x8xbf16>, vector<8x180xbf16>, vector<4x180xf32> -> vector<4x180xf32>
    %73 = arith.addf %68, %72 : vector<4x180xf32>
    %74 = vector.extract_strided_slice %37 {offsets = [0, 37], sizes = [8, 180], strides = [1, 1]} : vector<8x218xbf16> to vector<8x180xbf16>
    %c7 = arith.constant 7 : index
    %c0_37 = arith.constant 0 : index
    %c0_38 = arith.constant 0 : index
    %75 = vector.load %arg5[%c7, %c0_37, %c0_38] : memref<9x4x8xbf16, #tpu.memory_space<vmem>>, vector<1x4x8xbf16>
    %76 = vector.shape_cast %75 : vector<1x4x8xbf16> to vector<4x8xbf16>
    %cst_39 = arith.constant dense<0.000000e+00> : vector<4x180xf32>
    %77 = tpu.matmul %76, %74, %cst_39 {dimension_numbers = #tpu.dot_dimension_numbers<[1], [0], [0], [1], [0, 0, 1, 1], [], []>} : vector<4x8xbf16>, vector<8x180xbf16>, vector<4x180xf32> -> vector<4x180xf32>
    %78 = arith.addf %73, %77 : vector<4x180xf32>
    %79 = vector.extract_strided_slice %37 {offsets = [0, 38], sizes = [8, 180], strides = [1, 1]} : vector<8x218xbf16> to vector<8x180xbf16>
    %c8 = arith.constant 8 : index
    %c0_40 = arith.constant 0 : index
    %c0_41 = arith.constant 0 : index
    %80 = vector.load %arg5[%c8, %c0_40, %c0_41] : memref<9x4x8xbf16, #tpu.memory_space<vmem>>, vector<1x4x8xbf16>
    %81 = vector.shape_cast %80 : vector<1x4x8xbf16> to vector<4x8xbf16>
    %cst_42 = arith.constant dense<0.000000e+00> : vector<4x180xf32>
    %82 = tpu.matmul %81, %79, %cst_42 {dimension_numbers = #tpu.dot_dimension_numbers<[1], [0], [0], [1], [0, 0, 1, 1], [], []>} : vector<4x8xbf16>, vector<8x180xbf16>, vector<4x180xf32> -> vector<4x180xf32>
    %83 = arith.addf %78, %82 : vector<4x180xf32>
    %c0_43 = arith.constant 0 : index
    %c0_44 = arith.constant 0 : index
    %84 = vector.load %arg6[%c0_43, %c0_44] : memref<4x1xf32, #tpu.memory_space<vmem>>, vector<4x1xf32>
    %85 = vector.broadcast %84 : vector<4x1xf32> to vector<4x180xf32>
    %86 = arith.mulf %83, %85 : vector<4x180xf32>
    %c0_45 = arith.constant 0 : index
    %c0_46 = arith.constant 0 : index
    %87 = vector.load %arg7[%c0_45, %c0_46] : memref<4x1xf32, #tpu.memory_space<vmem>>, vector<4x1xf32>
    %88 = vector.broadcast %87 : vector<4x1xf32> to vector<4x180xf32>
    %89 = arith.addf %86, %88 : vector<4x180xf32>
    %cst_47 = arith.constant 0.000000e+00 : f32
    %90 = vector.broadcast %cst_47 : f32 to vector<4x180xf32>
    %91 = arith.maximumf %89, %90 : vector<4x180xf32>
    %92 = vector.broadcast %34 : vector<1x180xf32> to vector<4x180xf32>
    %93 = arith.mulf %91, %92 : vector<4x180xf32>
    %94 = arith.truncf %93 : vector<4x180xf32> to vector<4x180xbf16>
    %cst_48 = arith.constant 0.000000e+00 : bf16
    %95 = vector.broadcast %cst_48 : bf16 to vector<4x19xbf16>
    %96 = tpu.concatenate %95, %94, %95 in 1 : vector<4x19xbf16>, vector<4x180xbf16>, vector<4x19xbf16> -> vector<4x218xbf16>
    %cst_49 = arith.constant 0.000000e+00 : f32
    %97 = vector.broadcast %cst_49 : f32 to vector<4x180xf32>
    %98 = vector.extract_strided_slice %96 {offsets = [0, 0], sizes = [4, 180], strides = [1, 1]} : vector<4x218xbf16> to vector<4x180xbf16>
    %c0_50 = arith.constant 0 : index
    %c0_51 = arith.constant 0 : index
    %c0_52 = arith.constant 0 : index
    %99 = vector.load %arg8[%c0_50, %c0_51, %c0_52] : memref<9x4x4xbf16, #tpu.memory_space<vmem>>, vector<1x4x4xbf16>
    %100 = vector.shape_cast %99 : vector<1x4x4xbf16> to vector<4x4xbf16>
    %cst_53 = arith.constant dense<0.000000e+00> : vector<4x180xf32>
    %101 = tpu.matmul %100, %98, %cst_53 {dimension_numbers = #tpu.dot_dimension_numbers<[1], [0], [0], [1], [0, 0, 1, 1], [], []>} : vector<4x4xbf16>, vector<4x180xbf16>, vector<4x180xf32> -> vector<4x180xf32>
    %102 = arith.addf %97, %101 : vector<4x180xf32>
    %103 = vector.extract_strided_slice %96 {offsets = [0, 1], sizes = [4, 180], strides = [1, 1]} : vector<4x218xbf16> to vector<4x180xbf16>
    %c1_54 = arith.constant 1 : index
    %c0_55 = arith.constant 0 : index
    %c0_56 = arith.constant 0 : index
    %104 = vector.load %arg8[%c1_54, %c0_55, %c0_56] : memref<9x4x4xbf16, #tpu.memory_space<vmem>>, vector<1x4x4xbf16>
    %105 = vector.shape_cast %104 : vector<1x4x4xbf16> to vector<4x4xbf16>
    %cst_57 = arith.constant dense<0.000000e+00> : vector<4x180xf32>
    %106 = tpu.matmul %105, %103, %cst_57 {dimension_numbers = #tpu.dot_dimension_numbers<[1], [0], [0], [1], [0, 0, 1, 1], [], []>} : vector<4x4xbf16>, vector<4x180xbf16>, vector<4x180xf32> -> vector<4x180xf32>
    %107 = arith.addf %102, %106 : vector<4x180xf32>
    %108 = vector.extract_strided_slice %96 {offsets = [0, 2], sizes = [4, 180], strides = [1, 1]} : vector<4x218xbf16> to vector<4x180xbf16>
    %c2_58 = arith.constant 2 : index
    %c0_59 = arith.constant 0 : index
    %c0_60 = arith.constant 0 : index
    %109 = vector.load %arg8[%c2_58, %c0_59, %c0_60] : memref<9x4x4xbf16, #tpu.memory_space<vmem>>, vector<1x4x4xbf16>
    %110 = vector.shape_cast %109 : vector<1x4x4xbf16> to vector<4x4xbf16>
    %cst_61 = arith.constant dense<0.000000e+00> : vector<4x180xf32>
    %111 = tpu.matmul %110, %108, %cst_61 {dimension_numbers = #tpu.dot_dimension_numbers<[1], [0], [0], [1], [0, 0, 1, 1], [], []>} : vector<4x4xbf16>, vector<4x180xbf16>, vector<4x180xf32> -> vector<4x180xf32>
    %112 = arith.addf %107, %111 : vector<4x180xf32>
    %113 = vector.extract_strided_slice %96 {offsets = [0, 18], sizes = [4, 180], strides = [1, 1]} : vector<4x218xbf16> to vector<4x180xbf16>
    %c3_62 = arith.constant 3 : index
    %c0_63 = arith.constant 0 : index
    %c0_64 = arith.constant 0 : index
    %114 = vector.load %arg8[%c3_62, %c0_63, %c0_64] : memref<9x4x4xbf16, #tpu.memory_space<vmem>>, vector<1x4x4xbf16>
    %115 = vector.shape_cast %114 : vector<1x4x4xbf16> to vector<4x4xbf16>
    %cst_65 = arith.constant dense<0.000000e+00> : vector<4x180xf32>
    %116 = tpu.matmul %115, %113, %cst_65 {dimension_numbers = #tpu.dot_dimension_numbers<[1], [0], [0], [1], [0, 0, 1, 1], [], []>} : vector<4x4xbf16>, vector<4x180xbf16>, vector<4x180xf32> -> vector<4x180xf32>
    %117 = arith.addf %112, %116 : vector<4x180xf32>
    %118 = vector.extract_strided_slice %96 {offsets = [0, 19], sizes = [4, 180], strides = [1, 1]} : vector<4x218xbf16> to vector<4x180xbf16>
    %c4_66 = arith.constant 4 : index
    %c0_67 = arith.constant 0 : index
    %c0_68 = arith.constant 0 : index
    %119 = vector.load %arg8[%c4_66, %c0_67, %c0_68] : memref<9x4x4xbf16, #tpu.memory_space<vmem>>, vector<1x4x4xbf16>
    %120 = vector.shape_cast %119 : vector<1x4x4xbf16> to vector<4x4xbf16>
    %cst_69 = arith.constant dense<0.000000e+00> : vector<4x180xf32>
    %121 = tpu.matmul %120, %118, %cst_69 {dimension_numbers = #tpu.dot_dimension_numbers<[1], [0], [0], [1], [0, 0, 1, 1], [], []>} : vector<4x4xbf16>, vector<4x180xbf16>, vector<4x180xf32> -> vector<4x180xf32>
    %122 = arith.addf %117, %121 : vector<4x180xf32>
    %123 = vector.extract_strided_slice %96 {offsets = [0, 20], sizes = [4, 180], strides = [1, 1]} : vector<4x218xbf16> to vector<4x180xbf16>
    %c5_70 = arith.constant 5 : index
    %c0_71 = arith.constant 0 : index
    %c0_72 = arith.constant 0 : index
    %124 = vector.load %arg8[%c5_70, %c0_71, %c0_72] : memref<9x4x4xbf16, #tpu.memory_space<vmem>>, vector<1x4x4xbf16>
    %125 = vector.shape_cast %124 : vector<1x4x4xbf16> to vector<4x4xbf16>
    %cst_73 = arith.constant dense<0.000000e+00> : vector<4x180xf32>
    %126 = tpu.matmul %125, %123, %cst_73 {dimension_numbers = #tpu.dot_dimension_numbers<[1], [0], [0], [1], [0, 0, 1, 1], [], []>} : vector<4x4xbf16>, vector<4x180xbf16>, vector<4x180xf32> -> vector<4x180xf32>
    %127 = arith.addf %122, %126 : vector<4x180xf32>
    %128 = vector.extract_strided_slice %96 {offsets = [0, 36], sizes = [4, 180], strides = [1, 1]} : vector<4x218xbf16> to vector<4x180xbf16>
    %c6_74 = arith.constant 6 : index
    %c0_75 = arith.constant 0 : index
    %c0_76 = arith.constant 0 : index
    %129 = vector.load %arg8[%c6_74, %c0_75, %c0_76] : memref<9x4x4xbf16, #tpu.memory_space<vmem>>, vector<1x4x4xbf16>
    %130 = vector.shape_cast %129 : vector<1x4x4xbf16> to vector<4x4xbf16>
    %cst_77 = arith.constant dense<0.000000e+00> : vector<4x180xf32>
    %131 = tpu.matmul %130, %128, %cst_77 {dimension_numbers = #tpu.dot_dimension_numbers<[1], [0], [0], [1], [0, 0, 1, 1], [], []>} : vector<4x4xbf16>, vector<4x180xbf16>, vector<4x180xf32> -> vector<4x180xf32>
    %132 = arith.addf %127, %131 : vector<4x180xf32>
    %133 = vector.extract_strided_slice %96 {offsets = [0, 37], sizes = [4, 180], strides = [1, 1]} : vector<4x218xbf16> to vector<4x180xbf16>
    %c7_78 = arith.constant 7 : index
    %c0_79 = arith.constant 0 : index
    %c0_80 = arith.constant 0 : index
    %134 = vector.load %arg8[%c7_78, %c0_79, %c0_80] : memref<9x4x4xbf16, #tpu.memory_space<vmem>>, vector<1x4x4xbf16>
    %135 = vector.shape_cast %134 : vector<1x4x4xbf16> to vector<4x4xbf16>
    %cst_81 = arith.constant dense<0.000000e+00> : vector<4x180xf32>
    %136 = tpu.matmul %135, %133, %cst_81 {dimension_numbers = #tpu.dot_dimension_numbers<[1], [0], [0], [1], [0, 0, 1, 1], [], []>} : vector<4x4xbf16>, vector<4x180xbf16>, vector<4x180xf32> -> vector<4x180xf32>
    %137 = arith.addf %132, %136 : vector<4x180xf32>
    %138 = vector.extract_strided_slice %96 {offsets = [0, 38], sizes = [4, 180], strides = [1, 1]} : vector<4x218xbf16> to vector<4x180xbf16>
    %c8_82 = arith.constant 8 : index
    %c0_83 = arith.constant 0 : index
    %c0_84 = arith.constant 0 : index
    %139 = vector.load %arg8[%c8_82, %c0_83, %c0_84] : memref<9x4x4xbf16, #tpu.memory_space<vmem>>, vector<1x4x4xbf16>
    %140 = vector.shape_cast %139 : vector<1x4x4xbf16> to vector<4x4xbf16>
    %cst_85 = arith.constant dense<0.000000e+00> : vector<4x180xf32>
    %141 = tpu.matmul %140, %138, %cst_85 {dimension_numbers = #tpu.dot_dimension_numbers<[1], [0], [0], [1], [0, 0, 1, 1], [], []>} : vector<4x4xbf16>, vector<4x180xbf16>, vector<4x180xf32> -> vector<4x180xf32>
    %142 = arith.addf %137, %141 : vector<4x180xf32>
    %c0_86 = arith.constant 0 : index
    %c0_87 = arith.constant 0 : index
    %143 = vector.load %arg9[%c0_86, %c0_87] : memref<4x1xf32, #tpu.memory_space<vmem>>, vector<4x1xf32>
    %144 = vector.broadcast %143 : vector<4x1xf32> to vector<4x180xf32>
    %145 = arith.mulf %142, %144 : vector<4x180xf32>
    %c0_88 = arith.constant 0 : index
    %c0_89 = arith.constant 0 : index
    %146 = vector.load %arg10[%c0_88, %c0_89] : memref<4x1xf32, #tpu.memory_space<vmem>>, vector<4x1xf32>
    %147 = vector.broadcast %146 : vector<4x1xf32> to vector<4x180xf32>
    %148 = arith.addf %145, %147 : vector<4x180xf32>
    %cst_90 = arith.constant 0.000000e+00 : f32
    %149 = vector.broadcast %cst_90 : f32 to vector<4x180xf32>
    %150 = arith.maximumf %148, %149 : vector<4x180xf32>
    %151 = vector.broadcast %34 : vector<1x180xf32> to vector<4x180xf32>
    %152 = arith.mulf %150, %151 : vector<4x180xf32>
    %153 = vector.extract_strided_slice %152 {offsets = [0, 18], sizes = [4, 144], strides = [1, 1]} : vector<4x180xf32> to vector<4x144xf32>
    %c0_91 = arith.constant 0 : index
    %c0_92 = arith.constant 0 : index
    %c0_93 = arith.constant 0 : index
    %154 = vector.load %arg12[%c0_91, %c0_92, %c0_93] : memref<1x4x144xf32, #tpu.memory_space<vmem>>, vector<1x4x144xf32>
    %155 = vector.shape_cast %154 : vector<1x4x144xf32> to vector<4x144xf32>
    %156 = vector.shape_cast %153 : vector<4x144xf32> to vector<1x4x144xf32>
    tpu.vector_store %arg12[%c0_91, %c0_92, %c0_93], %156 {strides = array<i32>} : memref<1x4x144xf32, #tpu.memory_space<vmem>>, vector<1x4x144xf32>,
    return
  }
  func.func @transform_0(%arg0: i32) -> (i32, i32, i32) {
    %c0_i32 = arith.constant 0 : i32
    %c0_i32_0 = arith.constant 0 : i32
    %c0_i32_1 = arith.constant 0 : i32
    return %arg0, %c0_i32, %c0_i32_0 : i32, i32, i32
  }
  func.func @transform_1(%arg0: i32) -> (i32, i32, i32, i32) {
    %c0_i32 = arith.constant 0 : i32
    %c0_i32_0 = arith.constant 0 : i32
    %c0_i32_1 = arith.constant 0 : i32
    %c0_i32_2 = arith.constant 0 : i32
    return %arg0, %c0_i32, %c0_i32_0, %c0_i32_1 : i32, i32, i32, i32
  }
  func.func @transform_2(%arg0: i32) -> (i32, i32) {
    %c0_i32 = arith.constant 0 : i32
    %c0_i32_0 = arith.constant 0 : i32
    %c0_i32_1 = arith.constant 0 : i32
    return %c0_i32, %c0_i32_0 : i32, i32
  }
  func.func @transform_3(%arg0: i32) -> (i32, i32) {
    %c0_i32 = arith.constant 0 : i32
    %c0_i32_0 = arith.constant 0 : i32
    %c0_i32_1 = arith.constant 0 : i32
    return %c0_i32, %c0_i32_0 : i32, i32
  }
  func.func @transform_4(%arg0: i32) -> (i32, i32, i32) {
    %c0_i32 = arith.constant 0 : i32
    %c0_i32_0 = arith.constant 0 : i32
    %c0_i32_1 = arith.constant 0 : i32
    %c0_i32_2 = arith.constant 0 : i32
    return %c0_i32, %c0_i32_0, %c0_i32_1 : i32, i32, i32
  }
  func.func @transform_5(%arg0: i32) -> (i32, i32) {
    %c0_i32 = arith.constant 0 : i32
    %c0_i32_0 = arith.constant 0 : i32
    %c0_i32_1 = arith.constant 0 : i32
    return %c0_i32, %c0_i32_0 : i32, i32
  }
  func.func @transform_6(%arg0: i32) -> (i32, i32) {
    %c0_i32 = arith.constant 0 : i32
    %c0_i32_0 = arith.constant 0 : i32
    %c0_i32_1 = arith.constant 0 : i32
    return %c0_i32, %c0_i32_0 : i32, i32
  }
  func.func @transform_7(%arg0: i32) -> (i32, i32, i32) {
    %c0_i32 = arith.constant 0 : i32
    %c0_i32_0 = arith.constant 0 : i32
    %c0_i32_1 = arith.constant 0 : i32
    %c0_i32_2 = arith.constant 0 : i32
    return %c0_i32, %c0_i32_0, %c0_i32_1 : i32, i32, i32
  }
  func.func @transform_8(%arg0: i32) -> (i32, i32) {
    %c0_i32 = arith.constant 0 : i32
    %c0_i32_0 = arith.constant 0 : i32
    %c0_i32_1 = arith.constant 0 : i32
    return %c0_i32, %c0_i32_0 : i32, i32
  }
  func.func @transform_9(%arg0: i32) -> (i32, i32) {
    %c0_i32 = arith.constant 0 : i32
    %c0_i32_0 = arith.constant 0 : i32
    %c0_i32_1 = arith.constant 0 : i32
    return %c0_i32, %c0_i32_0 : i32, i32
  }
  func.func @transform_10(%arg0: i32) -> (i32, i32) {
    %c0_i32 = arith.constant 0 : i32
    %c0_i32_0 = arith.constant 0 : i32
    %c0_i32_1 = arith.constant 0 : i32
    return %c0_i32, %c0_i32_0 : i32, i32
  }
  func.func @transform_11(%arg0: i32) -> (i32, i32, i32) {
    %c0_i32 = arith.constant 0 : i32
    %c0_i32_0 = arith.constant 0 : i32
    %c0_i32_1 = arith.constant 0 : i32
    return %arg0, %c0_i32, %c0_i32_0 : i32, i32, i32
  }
}

</mosaic_0001>

<bundles_post_ra>
// kernel: tpu_custom_call.1
= control target key start
LH: loop header
LB: loop body
LE: loop exit
PB: predicated region body
PF: predicated region fallthrough
CT: control target
= control target key end

     0   :  { %s3211_s0 = inlined_call_operand.vmem [shape: f32[2,4,180], index: 0, kind: input, shape index: {}]   ;;  %s3212_s1 = inlined_call_operand.vmem [shape: f32[2,4,4,8], index: 1, kind: input, shape index: {}]   ;;  %s3213_s2 = inlined_call_operand.vmem [shape: f32[10,4], index: 2, kind: input, shape index: {}]   ;;  %s3214_s3 = inlined_call_operand.vmem [shape: f32[8,18], index: 3, kind: input, shape index: {}]   ;;  %s3215_s4 = inlined_call_operand.vmem [shape: bf16[9,4,8], index: 4, kind: input, shape index: {}]   ;;  %s3216_s5 = inlined_call_operand.vmem [shape: f32[4,1], index: 5, kind: input, shape index: {}]   ;;  %s3217_s6 = inlined_call_operand.vmem [shape: f32[4,1], index: 6, kind: input, shape index: {}]   ;;  %s3218_s7 = inlined_call_operand.vmem [shape: bf16[9,4,4], index: 7, kind: input, shape index: {}]   ;;  %s3219_s8 = inlined_call_operand.vmem [shape: f32[4,1], index: 8, kind: input, shape index: {}]   ;;  %s3220_s9 = inlined_call_operand.vmem [shape: f32[4,1], index: 9, kind: input, shape index: {}]   ;;  %s3221_s10 = inlined_call_operand.vmem [shape: f32[1,180], index: 10, kind: input, shape index: {}]   ;;  %s3222_s11 = inlined_call_operand.hbm [shape: f32[2,4,144], index: 11, kind: output, shape index: {}]  }
   0x1   :  { %3229 = sst [smem:[#allocation5_spill]] %s3211_s0 }
   0x2   :  { %16 = vsyncpa [#allocation3], 0 }
   0x3   :  { %18 = vsyncpa [#allocation3 + $0x1], 0  ;;  %s2772_s17 = smov 0   ;;  %s2774_s18 = smov 0  }
   0x4   :  { %s2776_s19 = smov 0   ;;  %s2778_s20 = smov 0  }
   0x5 LB: > { %s2793_s21 = sadd.s32 4294967295, %s2693_s20   ;;  %s2422_s22 = sadd.s32 4294967294, %s2693_s20   ;;  %s2693_s20 = sphi %s2778_s20, %s3239_s20   ;;  %s2689_s19 = sphi %s2776_s19, %s3238_s19   ;;  %s2685_s18 = sphi %s2774_s18, %s3237_s18   ;;  %s2681_s17 = sphi %s2772_s17, %s3236_s17  }
   0x6   : > { %s2797_s23 = sadd.s32 1, %s2693_s20   ;;  %s272_s24 = sadd.s32 1, %s2689_s19 }
   0x7   : > { %s269_s25 = ssub.s32 %s2693_s20, %s2797_s23  ;;  %p282_p0 = scmp.ne.s32.totalorder %s2689_s19, %s2685_s18 }
   0x8   : > { %p270_p1 = scmp.eq.s32.totalorder %s269_s25, 0  ;;  %p283_p2 = scmp.eq.s32.totalorder %s2793_s21, 1 }
   0x9   : > { %p288_p3 = scmp.ne.s32.totalorder %s2685_s18, %s2681_s17  ;;  %p289_p4 = scmp.eq.s32.totalorder %s2422_s22, 1 }
   0xa   : > { %s2808_s26 = scalar_select %p270_p1, %s2689_s19, %s272_s24  }
   0xb   : > { %p2810_p5 = por %p283_p2, %p282_p0  ;;  %p2814_p6 = por %p289_p4, %p288_p3 }
   0xc   : > { %p2425_p7 = scmp.ge.s32.totalorder %s2693_s20, 1  ;;  %p350_p8 = scmp.lt.s32.totalorder %s2693_s20, 3 }
   0xe   : > { %p351_p9 = pnand %p2425_p7, %p350_p8 }
   0xf   : > { %p395_p10 = scmp.lt.s32.totalorder (!%p351_p9), %s2793_s21, 1  ;;  %s2695_s30 = smov (!%p351_p9), 36  }
  0x10   : > { %354 = sbr.rel (%p351_p9) target bundleno = 1648 (0x670), region = 64  ;;  %s2697_s14 = smov (!%p351_p9), 18  }
  0x11   : > { %s2698_s15 = smov (!%p351_p9), 72   ;;  %s2700_s22 = smov (!%p351_p9), 108  }
  0x12   : > { %s3227_s24 = smov (!%p351_p9), 126   ;;  %s2702_s25 = smov (!%p351_p9), 16  }
  0x13   : > { %s2703_s29 = smov (!%p351_p9), 34   ;;  %s3232_s0 = sld [smem:[#allocation5_spill]] (!%p351_p9) }
  0x15   : > { %v410_v0 = vld [vmem:[%s3213_s2] sm:$0xff]  ;;  %vm412_vm0 = vcmask 31744   ;;  %s2827_s12 = scalar_select %p395_p10, %s2793_s21, 1  ;;  %vm419_vm1 = vcmask 1043456   ;;  %v411_v3 = vld [vmem:[%s3213_s2 + $0x8] sm:$0x3] }
  0x16   : > { %2537 = vmatprep.mubr.msk.f32.mxu0 %vm412_vm0, %v410_v0  ;;  %2542 = vmatprep.mubr.msk.f32.mxu1 %vm412_vm0, %v410_v0  ;;  %v732_v6 = vld [vmem:[%s3214_s3] sm:$0xff]  ;;  %vm733_vm2 = vcmask 64512   ;;  %vm1066_vm3 = vcmask 1042434   ;;  %vm1063_vm4 = vcmask 1041409   ;;  %vm1069_vm5 = vcmask 1043459  }
  0x17   : > { %s2509_s13 = sshll.u32 %s2827_s12, 4  ;;  %vm1161_vm6 = vcmask 146432   ;;  %vm1163_vm7 = vcmask 293888   ;;  %vm1165_vm8 = vcmask 441344   ;;  %vm1167_vm9 = vcmask 588800  }
  0x18   : > { %s404_s16 = scalar_lea.vmem %s3212_s1, %s2509_s13  ;;  %s2696_s13 = smov 54   ;;  %vm1169_vm10 = vcmask 736256   ;;  %vm1171_vm11 = vcmask 883712   ;;  %vm1173_vm12 = vcmask 1031168   ;;  %vm1175_vm13 = vcmask 130048  }
  0x19   : > { %v406_v1 = vld [vmem:[%s404_s16] sm:$0xf]  ;;  %v407_v2 = vld [vmem:[%s404_s16 + $0x4] sm:$0xf]  ;;  %v408_v4 = vld [vmem:[%s404_s16 + $0x8] sm:$0xf] }
  0x1a   : > { %2535 = vmatprep.subr.msk.mxu0 %vm419_vm1, %v406_v1  ;;  %2540 = vmatprep.subr.msk.mxu1 %vm419_vm1, %v407_v2  ;;  %v409_v5 = vld [vmem:[%s404_s16 + $0xc] sm:$0xf]  ;;  %s2699_s16 = smov 90   ;;  %vm1177_vm14 = vcmask 277504   ;;  %vm1200_vm15 = vcmask 154624  }
  0x1b   : > { %2536 = vmatpush3.msk.msra.mxu0 %vm419_vm1, %v406_v1  ;;  %2541 = vmatpush3.msk.msra.mxu1 %vm419_vm1, %v407_v2 }
  0x1c   : > { %2538 = vmatmul.mubr.msk.f32.vlgmr.msra.gmra.mxu0 %vm412_vm0, %v411_v3  ;;  %2543 = vmatmul.mubr.msk.f32.vlgmr.msra.gmra.mxu1 %vm412_vm0, %v411_v3 }
  0x1d   : > { %2545 = vmatprep.subr.msk.mxu0 %vm419_vm1, %v408_v4  ;;  %2550 = vmatprep.subr.msk.mxu1 %vm419_vm1, %v409_v5 }
  0x1e   : > { %2546 = vmatpush3.msk.msra.mxu0 %vm419_vm1, %v408_v4  ;;  %2547 = vmatprep.mubr.msk.f32.mxu0 %vm412_vm0, %v410_v0 }
  0x1f   : > { %2551 = vmatpush3.msk.msra.mxu1 %vm419_vm1, %v409_v5  ;;  %2552 = vmatprep.mubr.msk.f32.mxu1 %vm412_vm0, %v410_v0 }
  0x20   : > { %2548 = vmatmul.mubr.msk.f32.vlgmr.msra.gmra.mxu0 %vm412_vm0, %v411_v3  ;;  %2553 = vmatmul.mubr.msk.f32.vlgmr.msra.gmra.mxu1 %vm412_vm0, %v411_v3 }
  0x21   : > { %2555 = vmatprep.subr.mxu0 %v732_v6  ;;  %2560 = vmatprep.subr.mxu1 %v732_v6 }
  0x22   : > { %2556 = vmatpush3.msra.mxu0 %v732_v6  ;;  %2561 = vmatpush3.msra.mxu1 %v732_v6 }
  0x23   : > { %2565 = vmatprep.subr.mxu0 %v732_v6  ;;  %2570 = vmatprep.subr.mxu1 %v732_v6 }
  0xdc   : > { %v2539_v7 = vpop.f32.mrf.mxu0  ;;  %v2544_v8 = vpop.f32.mrf.mxu1 }
  0xde   : > { %v489_v9 = vpop.f32.mrf.mxu0  ;;  %v567_v10 = vpop.f32.mrf.mxu1 }
  0xdf   : > { %2557 = vmatprep.mubr.msk.f32.mxu0 %vm733_vm2, %v489_v9  ;;  %2562 = vmatprep.mubr.msk.f32.mxu1 %vm733_vm2, %v567_v10 }
  0xe0   : > { %v2549_v11 = vpop.f32.mrf.mxu0  ;;  %v2554_v12 = vpop.f32.mrf.mxu1  ;;  %2558 = vmatmul.mubr.msk.f32.vlgmr.msra.gmra.mxu0 %vm733_vm2, %v2539_v7  ;;  %2563 = vmatmul.mubr.msk.f32.vlgmr.msra.gmra.mxu1 %vm733_vm2, %v2544_v8 }
  0xe1   : > { %2566 = vmatpush3.msra.mxu0 %v732_v6  ;;  %2571 = vmatpush3.msra.mxu1 %v732_v6 }
  0xe2   : > { %v645_v13 = vpop.f32.mrf.mxu0  ;;  %v723_v14 = vpop.f32.mrf.mxu1 }
  0xe3   : > { %2567 = vmatprep.mubr.msk.f32.mxu0 %vm733_vm2, %v645_v13  ;;  %2572 = vmatprep.mubr.msk.f32.mxu1 %vm733_vm2, %v723_v14 }
  0xe4   : > { %2568 = vmatmul.mubr.msk.f32.vlgmr.msra.gmra.mxu0 %vm733_vm2, %v2549_v11  ;;  %2573 = vmatmul.mubr.msk.f32.vlgmr.msra.gmra.mxu1 %vm733_vm2, %v2554_v12 }
 0x1a0   : > { %v2861_v15 = vpop.f32.mrf.mxu0  ;;  %v2863_v16 = vpop.f32.mrf.mxu1 }
 0x1a1   : > { %v1143_v48 = vrot.slane %v2863_v16, 7  ;;  %v1152_v63 = vrot.slane %v2861_v15, 1 }
 0x1a2   : > { %v2865_v17 = vpop.f32.mrf.mxu0  ;;  %v2867_v18 = vpop.f32.mrf.mxu1 }
 0x1a3   : > { %v1081_v19 = vrot.slane %v2865_v17, 2  ;;  %v1082_v20 = vrot.slane %v2867_v18, 1  ;;  %v1090_v21 = vrot.slane %v2865_v17, 3  ;;  %v1091_v24 = vrot.slane %v2867_v18, 2 }
 0x1a4   : > { %v2872_v22 = vpop.f32.mrf.mxu0  ;;  %v2874_v23 = vpop.f32.mrf.mxu1  ;;  %v1072_v25 = vrot.slane %v2865_v17, 1  ;;  %v1099_v26 = vrot.slane %v2865_v17, 4  ;;  %v1100_v27 = vrot.slane %v2867_v18, 3  ;;  %v1109_v39 = vrot.slane %v2865_v17, 5 }
 0x1a5   : > { %v1083_v30 = vsel %vm1063_vm4, %v1082_v20, %v1081_v19  ;;  %v1092_v31 = vsel %vm1063_vm4, %v1091_v24, %v1090_v21  ;;  %v1110_v43 = vrot.slane %v2867_v18, 4  ;;  %v1119_v50 = vrot.slane %v2865_v17, 6 }
 0x1a6   : > { %v2880_v28 = vpop.f32.mrf.mxu0  ;;  %v2882_v29 = vpop.f32.mrf.mxu1  ;;  %v1073_v36 = vsel %vm1063_vm4, %v2867_v18, %v1072_v25  ;;  %v1101_v37 = vsel %vm1063_vm4, %v1100_v27, %v1099_v26  ;;  %v1120_v53 = vrot.slane %v2867_v18, 5  ;;  %v1129_v57 = vrot.slane %v2865_v17, 7 }
 0x1a7   : > { %v1084_v32 = vsel %vm1066_vm3, %v2880_v28, %v1083_v30  ;;  %v1085_v33 = vrot.slane %v2882_v29, 7  ;;  %v1093_v34 = vrot.slane %v2880_v28, 1  ;;  %v1074_v35 = vrot.slane %v2880_v28, 7 }
 0x1a8   : > { %v1102_v38 = vrot.slane %v2880_v28, 2  ;;  %v1076_v42 = vrot.slane %v2882_v29, 6  ;;  %v1104_v46 = vrot.slane %v2882_v29, 1  ;;  %v1112_v47 = vrot.slane %v2880_v28, 3 }
 0x1a9   : > { %v1086_v40 = vsel %vm1069_vm5, %v1085_v33, %v1084_v32  ;;  %v1094_v41 = vsel %vm1066_vm3, %v1093_v34, %v1092_v31  ;;  %v1075_v45 = vsel %vm1066_vm3, %v1074_v35, %v1073_v36  ;;  %v1111_v51 = vsel %vm1063_vm4, %v1110_v43, %v1109_v39 }
 0x1aa   : > { %1087 = vrot.lane.b32.xlu0 %v1086_v40, %s2695_s30  ;;  %v1095_v44 = vsel %vm1069_vm5, %v2882_v29, %v1094_v41  ;;  %v1103_v49 = vsel %vm1066_vm3, %v1102_v38, %v1101_v37  ;;  %v1114_v52 = vrot.slane %v2882_v29, 2  ;;  %v1122_v54 = vrot.slane %v2880_v28, 4  ;;  %s2508_s30 = sshll.u32 %s2827_s12, 3  ;;  %s2704_s12 = smov 19  }
 0x1ab   : > { %1096 = vrot.lane.b32.xlu1 %v1095_v44, %s2696_s13  ;;  %v1077_v55 = vsel %vm1069_vm5, %v1076_v42, %v1075_v45  ;;  %v1113_v56 = vsel %vm1066_vm3, %v1112_v47, %v1111_v51  ;;  %v1130_v58 = vrot.slane %v2867_v18, 6  ;;  %v1105_v59 = vsel %vm1069_vm5, %v1104_v46, %v1103_v49  ;;  %s3223_s13 = smov 110  }
 0x1ac   : > { %v1121_v60 = vsel %vm1063_vm4, %v1120_v53, %v1119_v50  ;;  %v1124_v61 = vrot.slane %v2882_v29, 3  ;;  %v1132_v62 = vrot.slane %v2880_v28, 5  ;;  %v1145_v0 = vrot.slane %v2872_v22, 6 }
 0x1ad   : > { %v1123_v1 = vsel %vm1066_vm3, %v1122_v54, %v1121_v60  ;;  %v1154_v2 = vrot.slane %v2872_v22, 7  ;;  %v1147_v3 = vrot.slane %v2874_v23, 5  ;;  %v1115_v4 = vsel %vm1069_vm5, %v1114_v52, %v1113_v56  ;;  %v1209_v56 = vld [vmem:[%s3215_s4] sm:$0x3] }
 0x1ae   : > { %1078 = vrot.lane.b32.xlu0 %v1077_v55, %s2697_s14  ;;  %v1062_v5 = vrot.slane %v2867_v18, 7  ;;  %v1131_v6 = vsel %vm1063_vm4, %v1130_v58, %v1129_v57  ;;  %v1134_v7 = vrot.slane %v2882_v29, 4  ;;  %v1068_v8 = vrot.slane %v2882_v29, 5  ;;  %s3225_s14 = smov 109   ;;  %v1738_v57 = vld [vmem:[%s3216_s5] sm:$0xf] }
 0x1af   : > { %1106 = vrot.lane.b32.xlu1 %v1105_v59, %s2698_s15  ;;  %v1065_v9 = vrot.slane %v2880_v28, 6  ;;  %v1125_v10 = vsel %vm1069_vm5, %v1124_v61, %v1123_v1  ;;  %v1133_v11 = vsel %vm1066_vm3, %v1132_v62, %v1131_v6  ;;  %v1144_v12 = vsel %vm1063_vm4, %v1143_v48, %v2861_v15  ;;  %s399_s15 = scalar_lea.vmem %s3232_s0, %s2508_s30  ;;  %v1746_v58 = vld [vmem:[%s3217_s6] sm:$0xf]  ;;  %s3235_s30 = smov 109  }
 0x1b0   : > { %v1064_v13 = vsel %vm1063_vm4, %v1062_v5, %v2865_v17  ;;  %v1146_v14 = vsel %vm1066_vm3, %v1145_v0, %v1144_v12  ;;  %v1153_v20 = vsel %vm1063_vm4, %v2863_v16, %v1152_v63  ;;  %v1156_v21 = vrot.slane %v2874_v23, 6  ;;  %v1179_v38 = vld [vmem:[%s399_s15] sm:$0xff]  ;;  %s2709_s15 = smov 92  }
 0x1b1   : > { %v1067_v18 = vsel %vm1066_vm3, %v1065_v9, %v1064_v13  ;;  %v1135_v22 = vsel %vm1069_vm5, %v1134_v7, %v1133_v11  ;;  %v1148_v15 = vsel %vm1069_vm5, %v1147_v3, %v1146_v14  ;;  %v1155_v17 = vsel %vm1066_vm3, %v1154_v2, %v1153_v20  ;;  %v2451_v1 = vld [vmem:[%s3215_s4 + $0x2] sm:$0x3]  ;;  %v2459_v11 = vld [vmem:[%s3215_s4 + $0x6] sm:$0x3] }
 0x1b2   : > { %1116 = vrot.lane.b32.xlu0 %v1115_v4, %s2699_s16  ;;  %v1070_v19 = vsel %vm1069_vm5, %v1068_v8, %v1067_v18  ;;  %v1157_v24 = vsel %vm1069_vm5, %v1156_v21, %v1155_v17  ;;  %v1181_v43 = vcombine.high %v1179_v38, %v1179_v38  ;;  %v2705_v50 = vmov 0  }
 0x1b3   : > { %1126 = vrot.lane.b32.xlu1 %v1125_v10, %s2700_s22  ;;  %1261 = vmatprep.mubr.bf16.mxu0 %v2705_v50  ;;  %vm1206_vm3 = vcmask 580608   ;;  %vm1218_vm4 = vcmask 1039360   ;;  %vm1384_vm5 = vcmask 900096   ;;  %v2456_v10 = vld [vmem:[%s3215_s4 + $0x4] sm:$0x3] }
 0x1b4   : > { %1309 = vmatprep.mubr.bf16.mxu1 %v2705_v50  ;;  %2630 = vset.pattern.permute.xlu1 %v2705_v50 }
 0x1b5   : > { %2631 = vset.pattern.permute.xlu0 %v2705_v50 }
 0x1b6   : > { %1136 = vrot.lane.b32.xlu0 %v1135_v22, %s3227_s24  ;;  %v2462_v22 = vld [vmem:[%s3215_s4 + $0x8] sm:$0x3] }
 0x1b7   : > { %1149 = vrot.lane.b32.xlu1 %v1148_v15, %s2702_s25  ;;  %s2706_s25 = smov 127   ;;  %v2465_v15 = vld [vmem:[%s3215_s4 + $0xa] sm:$0x3] }
 0x1ba   : > { %1158 = vrot.lane.b32.xlu0 %v1157_v24, %s2703_s29  ;;  %s2710_s29 = smov 91  }
 0x21c   : > { %v1088_v25 = vpop.permute.xlu0 %1087 }
 0x21d   : > { %v1097_v16 = vpop.permute.xlu1 %1096 }
 0x220   : > { %v1079_v23 = vpop.permute.xlu0 %1078 }
 0x221   : > { %v1162_v26 = vsel %vm1161_vm6, %v1070_v19, %v1079_v23  ;;  %v1107_v27 = vpop.permute.xlu1 %1106  ;;  %vm1444_vm6 = vcmask 891904  }
 0x222   : > { %v1164_v28 = vsel %vm1163_vm7, %v1162_v26, %v1088_v25  ;;  %vm1564_vm7 = vcmask 752640  }
 0x223   : > { %v1166_v29 = vsel %vm1165_vm8, %v1164_v28, %v1097_v16  ;;  %vm1624_vm8 = vcmask 744448   ;;  %v2468_v28 = vld [vmem:[%s3215_s4 + $0xc] sm:$0x3] }
 0x224   : > { %v1168_v30 = vsel %vm1167_vm9, %v1166_v29, %v1107_v27  ;;  %v1117_v31 = vpop.permute.xlu0 %1116  ;;  %v2471_v29 = vld [vmem:[%s3215_s4 + $0xe] sm:$0x3] }
 0x225   : > { %v1170_v32 = vsel %vm1169_vm10, %v1168_v30, %v1117_v31  ;;  %v1127_v33 = vpop.permute.xlu1 %1126 }
 0x226   : > { %v1172_v34 = vsel %vm1171_vm11, %v1170_v32, %v1127_v33 }
 0x228   : > { %v1137_v35 = vpop.permute.xlu0 %1136 }
 0x229   : > { %v1174_v36 = vsel %vm1173_vm12, %v1172_v34, %v1137_v35  ;;  %v1150_v37 = vpop.permute.xlu1 %1149  ;;  %v2474_v34 = vld [vmem:[%s3215_s4 + $0x10] sm:$0x3] }
 0x22a   : > { %v1185_v39 = vrot.slane %v1174_v36, 4  ;;  %v1176_v40 = vsel %vm1175_vm13, %v1137_v35, %v1150_v37 }
 0x22c   : > { %v1159_v41 = vpop.permute.xlu0 %1158  ;;  %v1189_v42 = vsel %vm419_vm1, %v1179_v38, %v1185_v39 }
 0x22d   : > { %v1178_v44 = vsel %vm1177_vm14, %v1176_v40, %v1159_v41  ;;  %v1192_v45 = vpack.c.bf16 %v1189_v42, %v1189_v42 }
 0x22e   : > { %v1186_v46 = vrot.slane %v1178_v44, 4 }
 0x22f   : > { %1196 = vrot.lane.b32.xlu1 %v1192_v45, %s2704_s12 }
 0x230   : > { %v1190_v47 = vsel %vm419_vm1, %v1181_v43, %v1186_v46 }
 0x231   : > { %v1193_v48 = vpack.c.bf16 %v1190_v47, %v1190_v47 }
 0x233   : > { %1198 = vrot.lane.b32.xlu0 %v1193_v48, %s2704_s12 }
 0x2a1   : > { %v1197_v49 = vpop.permute.xlu1 %1196 }
 0x2a2   : > { %v1205_v51 = vsel %vm1200_vm15, 0, %v1197_v49 }
 0x2a3   : > { %1214 = vrot.lane.b32.xlu1 %v1205_v51, %s2706_s25  ;;  %v1273_v55 = vsel %vm419_vm1, %v1205_v51, 0 }
 0x2a5   : > { %v1199_v52 = vpop.permute.xlu0 %1198 }
 0x2a6   : > { %v1201_v53 = vsel %vm1200_vm15, %v1197_v49, %v1199_v52 }
 0x2a7   : > { %v1208_v54 = vsel %vm1206_vm3, %v1201_v53, 0  ;;  %1320 = vrot.lane.b32.xlu1 %v1205_v51, %s3227_s24 }
 0x2a8   : > { %1216 = vrot.lane.b32.xlu0 %v1208_v54, %s2706_s25  ;;  %2454 = vmatprep.subr.msk.bf16.mxu1 %vm419_vm1, %v1208_v54 }
 0x2a9   : > { %1292 = vmatpush1.bf16.msra.mxu1 %v1273_v55 }
 0x2ab   : > { %1380 = vrot.lane.b32.xlu1 %v1205_v51, %s3223_s13 }
 0x2ac   : > { %1322 = vrot.lane.b32.xlu0 %v1208_v54, %s3227_s24  ;;  %2455 = vmatmul.mubr.msk.bf16.vlgmr.msra.gmra.mxu1 %vm733_vm2, %v1209_v56  ;;  %s3233_s24 = smov 126  }
 0x2ad   : > { %1427 = vmatprep.mubr.bf16.mxu1 %v2705_v50 }
 0x2af   : > { %1440 = vrot.lane.b32.xlu1 %v1205_v51, %s3225_s14 }
 0x2b0   : > { %1382 = vrot.lane.b32.xlu0 %v1208_v54, %s3223_s13  ;;  %s3234_s13 = smov 110  }
 0x2b3   : > { %1500 = vrot.lane.b32.xlu1 %v1205_v51, %s2700_s22 }
 0x2b4   : > { %1442 = vrot.lane.b32.xlu0 %v1208_v54, %s3225_s14 }
 0x2b7   : > { %1560 = vrot.lane.b32.xlu1 %v1205_v51, %s2709_s15 }
 0x2b8   : > { %1502 = vrot.lane.b32.xlu0 %v1208_v54, %s2700_s22 }
 0x2bb   : > { %1620 = vrot.lane.b32.xlu1 %v1205_v51, %s2710_s29 }
 0x2bc   : > { %1562 = vrot.lane.b32.xlu0 %v1208_v54, %s2709_s15 }
 0x2bf   : > { %1680 = vrot.lane.b32.xlu1 %v1205_v51, %s2699_s16 }
 0x2c0   : > { %1622 = vrot.lane.b32.xlu0 %v1208_v54, %s2710_s29 }
 0x2c3   : > { %1741 = vperm.xlu1 %2630, %v1738_v57  }
 0x2c4   : > { %1682 = vrot.lane.b32.xlu0 %v1208_v54, %s2699_s16 }
 0x2c8   : > { %1749 = vperm.xlu0 %2631, %v1746_v58  }
 0x315   : > { %v1215_v59 = vpop.permute.xlu1 %1214 }
 0x319   : > { %v1321_v60 = vpop.permute.xlu1 %1320 }
 0x31a   : > { %v1217_v61 = vpop.permute.xlu0 %1216 }
 0x31b   : > { %v1219_v62 = vsel %vm1218_vm4, %v1215_v59, %v1217_v61  ;;  %2452 = vmatprep.subr.msk.bf16.mxu0 %vm419_vm1, %v1217_v61 }
 0x31c   : > { %v1224_v63 = vsel %vm419_vm1, %v1219_v62, 0 }
 0x31d   : > { %v1381_v0 = vpop.permute.xlu1 %1380  ;;  %1244 = vmatpush1.bf16.msra.mxu0 %v1224_v63 }
 0x31e   : > { %v1323_v2 = vpop.permute.xlu0 %1322 }
 0x31f   : > { %v1325_v3 = vsel %vm1173_vm12, %v1321_v60, %v1323_v2  ;;  %2457 = vmatprep.subr.msk.bf16.mxu0 %vm419_vm1, %v1323_v2 }
 0x320   : > { %v1330_v4 = vsel %vm419_vm1, %v1325_v3, 0  ;;  %2453 = vmatmul.mubr.msk.bf16.vlgmr.msra.gmra.mxu0 %vm733_vm2, %v2451_v1 }
 0x321   : > { %v1441_v5 = vpop.permute.xlu1 %1440  ;;  %1350 = vmatpush1.bf16.msra.mxu0 %v1330_v4  ;;  %1367 = vmatprep.mubr.bf16.mxu0 %v2705_v50 }
 0x322   : > { %v1383_v6 = vpop.permute.xlu0 %1382 }
 0x323   : > { %v1385_v7 = vsel %vm1384_vm5, %v1381_v0, %v1383_v6  ;;  %2460 = vmatprep.subr.msk.bf16.mxu1 %vm419_vm1, %v1383_v6 }
 0x324   : > { %v1390_v8 = vsel %vm419_vm1, %v1385_v7, 0  ;;  %v1757_v7 = vlaneseq }
 0x325   : > { %v1501_v9 = vpop.permute.xlu1 %1500  ;;  %1410 = vmatpush1.bf16.msra.mxu1 %v1390_v8 }
 0x326   : > { %v1443_v12 = vpop.permute.xlu0 %1442 }
 0x327   : > { %v1445_v13 = vsel %vm1444_vm6, %v1441_v5, %v1443_v12  ;;  %2463 = vmatprep.subr.msk.bf16.mxu0 %vm419_vm1, %v1443_v12 }
 0x328   : > { %v1450_v14 = vsel %vm419_vm1, %v1445_v13, 0  ;;  %2458 = vmatmul.mubr.msk.bf16.vlgmr.msra.gmra.mxu0 %vm733_vm2, %v2456_v10  ;;  %2461 = vmatmul.mubr.msk.bf16.vlgmr.msra.gmra.mxu1 %vm733_vm2, %v2459_v11 }
 0x329   : > { %1470 = vmatpush1.bf16.msra.mxu0 %v1450_v14  ;;  %1487 = vmatprep.mubr.bf16.mxu0 %v2705_v50  ;;  %v1561_v18 = vpop.permute.xlu1 %1560 }
 0x32a   : > { %v1503_v19 = vpop.permute.xlu0 %1502  ;;  %1547 = vmatprep.mubr.bf16.mxu1 %v2705_v50 }
 0x32b   : > { %v1505_v20 = vsel %vm1171_vm11, %v1501_v9, %v1503_v19  ;;  %2466 = vmatprep.subr.msk.bf16.mxu1 %vm419_vm1, %v1503_v19 }
 0x32c   : > { %v1510_v21 = vsel %vm419_vm1, %v1505_v20, 0 }
 0x32d   : > { %1530 = vmatpush1.bf16.msra.mxu1 %v1510_v21  ;;  %v1621_v25 = vpop.permute.xlu1 %1620 }
 0x32e   : > { %v1563_v17 = vpop.permute.xlu0 %1562 }
 0x32f   : > { %v1565_v24 = vsel %vm1564_vm7, %v1561_v18, %v1563_v17  ;;  %2469 = vmatprep.subr.msk.bf16.mxu0 %vm419_vm1, %v1563_v17  ;;  %v1758_v18 = vshrl.u32 %v1757_v7, 7 }
 0x330   : > { %v1570_v16 = vsel %vm419_vm1, %v1565_v24, 0  ;;  %2464 = vmatmul.mubr.msk.bf16.vlgmr.msra.gmra.mxu0 %vm733_vm2, %v2462_v22  ;;  %2467 = vmatmul.mubr.msk.bf16.vlgmr.msra.gmra.mxu1 %vm733_vm2, %v2465_v15 }
 0x331   : > { %1590 = vmatpush1.bf16.msra.mxu0 %v1570_v16  ;;  %1607 = vmatprep.mubr.bf16.mxu0 %v2705_v50  ;;  %v1681_v30 = vpop.permute.xlu1 %1680 }
 0x332   : > { %v1623_v23 = vpop.permute.xlu0 %1622  ;;  %1667 = vmatprep.mubr.bf16.mxu1 %v2705_v50 }
 0x333   : > { %v1625_v26 = vsel %vm1624_vm8, %v1621_v25, %v1623_v23  ;;  %2472 = vmatprep.subr.msk.bf16.mxu1 %vm419_vm1, %v1623_v23  ;;  %v1759_v25 = vsub.s32 0, %v1758_v18  ;;  %v1191_v23 = vld [vmem:[%s3221_s10] sm:$0x3] }
 0x334   : > { %v1630_v27 = vsel %vm419_vm1, %v1625_v26, 0 }
 0x335   : > { %1650 = vmatpush1.bf16.msra.mxu1 %v1630_v27 }
 0x336   : > { %v1683_v31 = vpop.permute.xlu0 %1682 }
 0x337   : > { %v1685_v32 = vsel %vm1169_vm10, %v1681_v30, %v1683_v31  ;;  %2475 = vmatprep.subr.msk.bf16.mxu0 %vm419_vm1, %v1683_v31 }
 0x338   : > { %v1690_v33 = vsel %vm419_vm1, %v1685_v32, 0  ;;  %2470 = vmatmul.mubr.msk.bf16.vlgmr.msra.gmra.mxu0 %vm733_vm2, %v2468_v28  ;;  %2473 = vmatmul.mubr.msk.bf16.vlgmr.msra.gmra.mxu1 %vm733_vm2, %v2471_v29  ;;  %v1763_v29 = vsub.s32 1, %v1758_v18  ;;  %v3064_v32 = vrot.slane %v1191_v23, %v1759_v25  ;;  %v2497_v25 = vld [vmem:[%s3218_s7 + $0xe] sm:$0x3] }
 0x339   : > { %1710 = vmatpush1.bf16.msra.mxu0 %v1690_v33  ;;  %1727 = vmatprep.mubr.bf16.mxu0 %v2705_v50 }
 0x33a   : > { %1834 = vmatprep.mubr.bf16.mxu1 %v2705_v50 }
 0x33e   : > { %v1742_v15 = vpop.permute.xlu1 %1741 }
 0x340   : > { %2476 = vmatmul.mubr.msk.bf16.vlgmr.msra.gmra.mxu0 %vm733_vm2, %v2474_v34  ;;  %vm1795_vm2 = vcmask 1041408  }
 0x341   : > { %1882 = vmatprep.mubr.bf16.mxu0 %v2705_v50 }
 0x343   : > { %v1750_v26 = vpop.permute.xlu0 %1749 }
 0x36c   : > { %v1311_v35 = vpop.f32.mrf.mxu1 }
 0x36e   : > { %v1313_v36 = vpop.f32.mrf.mxu1 }
 0x370   : > { %v1315_v37 = vpop.f32.mrf.mxu1 }
 0x372   : > { %v1316_v38 = vpop.f32.mrf.mxu1 }
 0x3e0   : > { %v1263_v39 = vpop.f32.mrf.mxu0 }
 0x3e1   : > { %v1312_v49 = vadd.f32 %v1311_v35, %v1263_v39  ;;  %v3066_v35 = vrot.slane %v1191_v23, %v1763_v29 }
 0x3e2   : > { %v1265_v40 = vpop.f32.mrf.mxu0 }
 0x3e3   : > { %v1314_v53 = vadd.f32 %v1313_v36, %v1265_v40 }
 0x3e4   : > { %v1267_v41 = vpop.f32.mrf.mxu0 }
 0x3e6   : > { %v1268_v42 = vpop.f32.mrf.mxu0 }
 0x3e8   : > { %v1369_v43 = vpop.f32.mrf.mxu0  ;;  %v1429_v44 = vpop.f32.mrf.mxu1 }
 0x3e9   : > { %v1376_v54 = vadd.f32 %v1369_v43, %v1312_v49  ;;  %v1782_v49 = vld [vmem:[%s3218_s7] sm:$0x3] }
 0x3ea   : > { %v1371_v45 = vpop.f32.mrf.mxu0  ;;  %v1431_v46 = vpop.f32.mrf.mxu1 }
 0x3eb   : > { %v1377_v57 = vadd.f32 %v1371_v45, %v1314_v53  ;;  %v1436_v60 = vadd.f32 %v1429_v44, %v1376_v54 }
 0x3ec   : > { %v1373_v47 = vpop.f32.mrf.mxu0  ;;  %v1433_v48 = vpop.f32.mrf.mxu1 }
 0x3ed   : > { %v1437_v63 = vadd.f32 %v1431_v46, %v1377_v57 }
 0x3ee   : > { %v1374_v51 = vpop.f32.mrf.mxu0  ;;  %v1434_v52 = vpop.f32.mrf.mxu1 }
 0x3ef   : > { %v2304_v51 = vld [vmem:[%s3219_s8] sm:$0xf] }
 0x3f0   : > { %v1489_v55 = vpop.f32.mrf.mxu0  ;;  %v1549_v56 = vpop.f32.mrf.mxu1  ;;  %v2312_v52 = vld [vmem:[%s3220_s9] sm:$0xf] }
 0x3f1   : > { %v1496_v0 = vadd.f32 %v1489_v55, %v1436_v60 }
 0x3f2   : > { %v1491_v58 = vpop.f32.mrf.mxu0  ;;  %v1551_v59 = vpop.f32.mrf.mxu1 }
 0x3f3   : > { %v1497_v3 = vadd.f32 %v1491_v58, %v1437_v63  ;;  %v1556_v6 = vadd.f32 %v1549_v56, %v1496_v0 }
 0x3f4   : > { %v1493_v61 = vpop.f32.mrf.mxu0  ;;  %v1553_v62 = vpop.f32.mrf.mxu1 }
 0x3f5   : > { %v1557_v10 = vadd.f32 %v1551_v59, %v1497_v3  ;;  %v2477_v59 = vld [vmem:[%s3218_s7 + $0x2] sm:$0x3] }
 0x3f6   : > { %v1494_v1 = vpop.f32.mrf.mxu0  ;;  %v1554_v2 = vpop.f32.mrf.mxu1 }
 0x3f8   : > { %v1609_v4 = vpop.f32.mrf.mxu0  ;;  %v1669_v5 = vpop.f32.mrf.mxu1 }
 0x3f9   : > { %v1616_v11 = vadd.f32 %v1609_v4, %v1556_v6  ;;  %v2482_v4 = vld [vmem:[%s3218_s7 + $0x4] sm:$0x3] }
 0x3fa   : > { %v1611_v8 = vpop.f32.mrf.mxu0  ;;  %v1671_v9 = vpop.f32.mrf.mxu1 }
 0x3fb   : > { %v1617_v14 = vadd.f32 %v1611_v8, %v1557_v10  ;;  %v1676_v21 = vadd.f32 %v1669_v5, %v1616_v11  ;;  %v2485_v5 = vld [vmem:[%s3218_s7 + $0x6] sm:$0x3] }
 0x3fc   : > { %v1613_v12 = vpop.f32.mrf.mxu0  ;;  %v1673_v13 = vpop.f32.mrf.mxu1 }
 0x3fd   : > { %v1677_v17 = vadd.f32 %v1671_v9, %v1617_v14  ;;  %v2488_v13 = vld [vmem:[%s3218_s7 + $0x8] sm:$0x3]  ;;  %v2491_v14 = vld [vmem:[%s3218_s7 + $0xa] sm:$0x3] }
 0x3fe   : > { %v1614_v19 = vpop.f32.mrf.mxu0  ;;  %v1674_v20 = vpop.f32.mrf.mxu1 }
 0x400   : > { %v1729_v22 = vpop.f32.mrf.mxu0 }
 0x401   : > { %v1736_v24 = vadd.f32 %v1729_v22, %v1676_v21 }
 0x402   : > { %v1731_v16 = vpop.f32.mrf.mxu0 }
 0x403   : > { %v1744_v27 = vmul.f32 %v1742_v15, %v1736_v24  ;;  %v1737_v28 = vadd.f32 %v1731_v16, %v1677_v17  ;;  %v2494_v24 = vld [vmem:[%s3218_s7 + $0xc] sm:$0x3] }
 0x404   : > { %v1733_v30 = vpop.f32.mrf.mxu0 }
 0x405   : > { %v1745_v31 = vmul.f32 %v1742_v15, %v1737_v28  ;;  %v1752_v33 = vadd.f32 %v1750_v26, %v1744_v27  ;;  %v2500_v28 = vld [vmem:[%s3218_s7 + $0x10] sm:$0x3] }
 0x406   : > { %v1734_v34 = vpop.f32.mrf.mxu0 }
 0x407   : > { %v1753_v36 = vadd.f32 %v1750_v26, %v1745_v31  ;;  %v1754_v37 = vmax.f32 %v1752_v33, 0.0 }
 0x409   : > { %v1755_v38 = vmax.f32 %v1753_v36, 0.0  ;;  %v1767_v39 = vmul.f32 %v3064_v32, %v1754_v37 }
 0x40b   : > { %v1768_v40 = vmul.f32 %v3066_v35, %v1755_v38  ;;  %v1769_v41 = vpack.c.bf16 %v1767_v39, %v1767_v39 }
 0x40d   : > { %1773 = vrot.lane.b32.xlu1 %v1769_v41, %s2704_s12  ;;  %v1770_v42 = vpack.c.bf16 %v1768_v40, %v1768_v40 }
 0x411   : > { %1775 = vrot.lane.b32.xlu1 %v1770_v42, %s2704_s12  ;;  %s392_s12 = sand.u32 1, %s2685_s18  }
 0x412   : > { %s2426_s14 = sshll.u32 %s392_s12, 3 }
 0x47f   : > { %v1774_v43 = vpop.permute.xlu1 %1773 }
 0x480   : > { %v1779_v44 = vsel %vm1200_vm15, 0, %v1774_v43 }
 0x481   : > { %1787 = vrot.lane.b32.xlu0 %v1779_v44, %s2706_s25  ;;  %v1846_v48 = vsel %vm1795_vm2, %v1779_v44, 0 }
 0x483   : > { %v1776_v45 = vpop.permute.xlu1 %1775 }
 0x484   : > { %v1777_v46 = vsel %vm1200_vm15, %v1774_v43, %v1776_v45 }
 0x485   : > { %v1781_v47 = vsel %vm1206_vm3, %v1777_v46, 0  ;;  %1893 = vrot.lane.b32.xlu0 %v1779_v44, %s3233_s24 }
 0x486   : > { %1789 = vrot.lane.b32.xlu1 %v1781_v47, %s2706_s25  ;;  %2480 = vmatprep.subr.msk.bf16.mxu0 %vm1795_vm2, %v1781_v47 }
 0x487   : > { %1865 = vmatpush1.bf16.msra.mxu0 %v1846_v48 }
 0x489   : > { %1952 = vrot.lane.b32.xlu0 %v1779_v44, %s3234_s13 }
 0x48a   : > { %1895 = vrot.lane.b32.xlu1 %v1781_v47, %s3233_s24  ;;  %2481 = vmatmul.mubr.msk.bf16.vlgmr.msra.gmra.mxu0 %vm412_vm0, %v1782_v49 }
 0x48b   : > { %1998 = vmatprep.mubr.bf16.mxu0 %v2705_v50 }
 0x48d   : > { %2011 = vrot.lane.b32.xlu0 %v1779_v44, %s3235_s30 }
 0x48e   : > { %1954 = vrot.lane.b32.xlu1 %v1781_v47, %s3234_s13 }
 0x491   : > { %2070 = vrot.lane.b32.xlu0 %v1779_v44, %s2700_s22 }
 0x492   : > { %2013 = vrot.lane.b32.xlu1 %v1781_v47, %s3235_s30 }
 0x495   : > { %2129 = vrot.lane.b32.xlu0 %v1779_v44, %s2709_s15 }
 0x496   : > { %2072 = vrot.lane.b32.xlu1 %v1781_v47, %s2700_s22  ;;  %s2510_s22 = sshll.u32 %s2793_s21, 7  ;;  %s2711_s21 = smov [#allocation2]  }
 0x497   : > { %s3175_s25 = scalar_lea.hbm %s3222_s11, %s2510_s22 }
 0x499   : > { %2188 = vrot.lane.b32.xlu0 %v1779_v44, %s2710_s29 }
 0x49a   : > { %2131 = vrot.lane.b32.xlu1 %v1781_v47, %s2709_s15  ;;  %s394_s15 = scalar_lea.vmem [#allocation2], %s2426_s14  ;;  %s2637_s14 = sshll.u32 %s2711_s21, 4  ;;  %s2638_s14 = int_to_ptr.vmem [resolvable:$false] %s2637_s14 }
 0x49b   : > { %s2639_s0 = scalar_lea.vmem %s2638_s14, 256 }
 0x49d   : > { %2247 = vrot.lane.b32.xlu0 %v1779_v44, %s2699_s16 }
 0x49e   : > { %2190 = vrot.lane.b32.xlu1 %v1781_v47, %s2710_s29 }
 0x4a1   : > { %2307 = vperm.xlu0 %2631, %v2304_v51  }
 0x4a2   : > { %2249 = vrot.lane.b32.xlu1 %v1781_v47, %s2699_s16  ;;  %s2351_s16 = sshll.u32 %s394_s15, 4  ;;  %s2352_s16 = int_to_ptr.vmem [resolvable:$true] %s2351_s16 }
 0x4a3   : > { %s2633_s24 = scalar_lea.vmem %s2352_s16, 128  ;;  %p2640_p0 = scmp.lt.s32.totalorder %s2352_s16, %s2638_s14 }
 0x4a4   : > { %p2634_p11 = scmp.ne.s32.totalorder %s2352_s16, %s2633_s24  ;;  %p2641_p1 = scmp.lt.s32.totalorder %s2639_s0, %s2633_s24 }
 0x4a6   : > { %2315 = vperm.xlu1 %2630, %v2312_v52   ;;  %p2635_p12 = pnand %p2634_p11, %p2810_p5  ;;  %p2642_p2 = por %p2641_p1, %p2640_p0 }
 0x4a8   : > { %p2636_p13 = pneg %p2635_p12 }
 0x4aa   : > { %p2643_p3 = pnand %p2642_p2, %p2636_p13 }
 0x4f3   : > { %v1788_v53 = vpop.permute.xlu0 %1787 }
 0x4f7   : > { %v1894_v54 = vpop.permute.xlu0 %1893 }
 0x4f8   : > { %v1790_v55 = vpop.permute.xlu1 %1789 }
 0x4f9   : > { %v1791_v56 = vsel %vm1218_vm4, %v1788_v53, %v1790_v55  ;;  %2478 = vmatprep.subr.msk.bf16.mxu1 %vm1795_vm2, %v1790_v55 }
 0x4fa   : > { %v1797_v57 = vsel %vm1795_vm2, %v1791_v56, 0 }
 0x4fb   : > { %v1953_v58 = vpop.permute.xlu0 %1952  ;;  %1817 = vmatpush1.bf16.msra.mxu1 %v1797_v57 }
 0x4fc   : > { %v1896_v60 = vpop.permute.xlu1 %1895 }
 0x4fd   : > { %v1897_v61 = vsel %vm1173_vm12, %v1894_v54, %v1896_v60  ;;  %2483 = vmatprep.subr.msk.bf16.mxu1 %vm1795_vm2, %v1896_v60 }
 0x4fe   : > { %v1902_v62 = vsel %vm1795_vm2, %v1897_v61, 0  ;;  %2479 = vmatmul.mubr.msk.bf16.vlgmr.msra.gmra.mxu1 %vm412_vm0, %v2477_v59 }
 0x4ff   : > { %v2012_v63 = vpop.permute.xlu0 %2011  ;;  %1922 = vmatpush1.bf16.msra.mxu1 %v1902_v62  ;;  %1939 = vmatprep.mubr.bf16.mxu1 %v2705_v50 }
 0x500   : > { %v1955_v0 = vpop.permute.xlu1 %1954 }
 0x501   : > { %v1956_v1 = vsel %vm1384_vm5, %v1953_v58, %v1955_v0  ;;  %2486 = vmatprep.subr.msk.bf16.mxu0 %vm1795_vm2, %v1955_v0 }
 0x502   : > { %v1961_v2 = vsel %vm1795_vm2, %v1956_v1, 0 }
 0x503   : > { %v2071_v3 = vpop.permute.xlu0 %2070  ;;  %1981 = vmatpush1.bf16.msra.mxu0 %v1961_v2 }
 0x504   : > { %v2014_v6 = vpop.permute.xlu1 %2013 }
 0x505   : > { %v2015_v7 = vsel %vm1444_vm6, %v2012_v63, %v2014_v6  ;;  %2489 = vmatprep.subr.msk.bf16.mxu1 %vm1795_vm2, %v2014_v6 }
 0x506   : > { %v2020_v8 = vsel %vm1795_vm2, %v2015_v7, 0  ;;  %2484 = vmatmul.mubr.msk.bf16.vlgmr.msra.gmra.mxu1 %vm412_vm0, %v2482_v4  ;;  %2487 = vmatmul.mubr.msk.bf16.vlgmr.msra.gmra.mxu0 %vm412_vm0, %v2485_v5 }
 0x507   : > { %2040 = vmatpush1.bf16.msra.mxu1 %v2020_v8  ;;  %2057 = vmatprep.mubr.bf16.mxu1 %v2705_v50  ;;  %v2130_v9 = vpop.permute.xlu0 %2129 }
 0x508   : > { %v2073_v10 = vpop.permute.xlu1 %2072  ;;  %2116 = vmatprep.mubr.bf16.mxu0 %v2705_v50 }
 0x509   : > { %v2074_v11 = vsel %vm1171_vm11, %v2071_v3, %v2073_v10  ;;  %2492 = vmatprep.subr.msk.bf16.mxu0 %vm1795_vm2, %v2073_v10 }
 0x50a   : > { %v2079_v12 = vsel %vm1795_vm2, %v2074_v11, 0 }
 0x50b   : > { %2099 = vmatpush1.bf16.msra.mxu0 %v2079_v12  ;;  %v2189_v20 = vpop.permute.xlu0 %2188 }
 0x50c   : > { %v2132_v18 = vpop.permute.xlu1 %2131 }
 0x50d   : > { %v2133_v19 = vsel %vm1564_vm7, %v2130_v9, %v2132_v18  ;;  %2495 = vmatprep.subr.msk.bf16.mxu1 %vm1795_vm2, %v2132_v18 }
 0x50e   : > { %v2138_v21 = vsel %vm1795_vm2, %v2133_v19, 0  ;;  %2490 = vmatmul.mubr.msk.bf16.vlgmr.msra.gmra.mxu1 %vm412_vm0, %v2488_v13  ;;  %2493 = vmatmul.mubr.msk.bf16.vlgmr.msra.gmra.mxu0 %vm412_vm0, %v2491_v14 }
 0x50f   : > { %2158 = vmatpush1.bf16.msra.mxu1 %v2138_v21  ;;  %2175 = vmatprep.mubr.bf16.mxu1 %v2705_v50  ;;  %v2248_v16 = vpop.permute.xlu0 %2247 }
 0x510   : > { %v2191_v22 = vpop.permute.xlu1 %2190  ;;  %2234 = vmatprep.mubr.bf16.mxu0 %v2705_v50 }
 0x511   : > { %v2192_v15 = vsel %vm1624_vm8, %v2189_v20, %v2191_v22  ;;  %2498 = vmatprep.subr.msk.bf16.mxu0 %vm1795_vm2, %v2191_v22 }
 0x512   : > { %v2197_v17 = vsel %vm1795_vm2, %v2192_v15, 0 }
 0x513   : > { %2217 = vmatpush1.bf16.msra.mxu0 %v2197_v17 }
 0x514   : > { %v2250_v23 = vpop.permute.xlu1 %2249 }
 0x515   : > { %v2251_v26 = vsel %vm1169_vm10, %v2248_v16, %v2250_v23  ;;  %2501 = vmatprep.subr.msk.bf16.mxu1 %vm1795_vm2, %v2250_v23 }
 0x516   : > { %v2256_v27 = vsel %vm1795_vm2, %v2251_v26, 0  ;;  %2496 = vmatmul.mubr.msk.bf16.vlgmr.msra.gmra.mxu1 %vm412_vm0, %v2494_v24  ;;  %2499 = vmatmul.mubr.msk.bf16.vlgmr.msra.gmra.mxu0 %vm412_vm0, %v2497_v25 }
 0x517   : > { %2276 = vmatpush1.bf16.msra.mxu1 %v2256_v27  ;;  %2293 = vmatprep.mubr.bf16.mxu1 %v2705_v50 }
 0x51c   : > { %v2308_v18 = vpop.permute.xlu0 %2307 }
 0x51e   : > { %2502 = vmatmul.mubr.msk.bf16.vlgmr.msra.gmra.mxu1 %vm412_vm0, %v2500_v28  ;;  %vm2333_vm0 = vcmask 130052  }
 0x51f   : > { %vm2334_vm9 = vmor %vm2333_vm0, %vm419_vm1 }
 0x521   : > { %v2316_v22 = vpop.permute.xlu1 %2315 }
 0x54a   : > { %v1884_v29 = vpop.f32.mrf.mxu0 }
 0x54c   : > { %v1886_v30 = vpop.f32.mrf.mxu0 }
 0x54e   : > { %v1888_v31 = vpop.f32.mrf.mxu0 }
 0x550   : > { %v1889_v33 = vpop.f32.mrf.mxu0 }
 0x5be   : > { %v1836_v34 = vpop.f32.mrf.mxu1 }
 0x5bf   : > { %v1885_v44 = vadd.f32 %v1884_v29, %v1836_v34 }
 0x5c0   : > { %v1838_v36 = vpop.f32.mrf.mxu1 }
 0x5c1   : > { %v1887_v47 = vadd.f32 %v1886_v30, %v1838_v36 }
 0x5c2   : > { %v1840_v37 = vpop.f32.mrf.mxu1 }
 0x5c4   : > { %v1841_v38 = vpop.f32.mrf.mxu1 }
 0x5c6   : > { %v1941_v39 = vpop.f32.mrf.mxu1  ;;  %v2000_v40 = vpop.f32.mrf.mxu0 }
 0x5c7   : > { %v1948_v48 = vadd.f32 %v1941_v39, %v1885_v44 }
 0x5c8   : > { %v1943_v41 = vpop.f32.mrf.mxu1  ;;  %v2002_v42 = vpop.f32.mrf.mxu0 }
 0x5c9   : > { %v1949_v52 = vadd.f32 %v1943_v41, %v1887_v47  ;;  %v2007_v55 = vadd.f32 %v2000_v40, %v1948_v48 }
 0x5ca   : > { %v1945_v43 = vpop.f32.mrf.mxu1  ;;  %v2004_v50 = vpop.f32.mrf.mxu0 }
 0x5cb   : > { %v2008_v58 = vadd.f32 %v2002_v42, %v1949_v52 }
 0x5cc   : > { %v1946_v45 = vpop.f32.mrf.mxu1  ;;  %v2005_v46 = vpop.f32.mrf.mxu0 }
 0x5ce   : > { %v2059_v49 = vpop.f32.mrf.mxu1  ;;  %v2118_v51 = vpop.f32.mrf.mxu0 }
 0x5cf   : > { %v2066_v59 = vadd.f32 %v2059_v49, %v2007_v55 }
 0x5d0   : > { %v2061_v53 = vpop.f32.mrf.mxu1  ;;  %v2120_v54 = vpop.f32.mrf.mxu0 }
 0x5d1   : > { %v2067_v62 = vadd.f32 %v2061_v53, %v2008_v58  ;;  %v2125_v1 = vadd.f32 %v2118_v51, %v2066_v59 }
 0x5d2   : > { %v2063_v56 = vpop.f32.mrf.mxu1  ;;  %v2122_v57 = vpop.f32.mrf.mxu0 }
 0x5d3   : > { %v2126_v4 = vadd.f32 %v2120_v54, %v2067_v62 }
 0x5d4   : > { %v2064_v60 = vpop.f32.mrf.mxu1  ;;  %v2123_v61 = vpop.f32.mrf.mxu0 }
 0x5d6   : > { %v2177_v63 = vpop.f32.mrf.mxu1  ;;  %v2236_v0 = vpop.f32.mrf.mxu0 }
 0x5d7   : > { %v2184_v5 = vadd.f32 %v2177_v63, %v2125_v1 }
 0x5d8   : > { %v2179_v2 = vpop.f32.mrf.mxu1  ;;  %v2238_v3 = vpop.f32.mrf.mxu0 }
 0x5d9   : > { %v2185_v8 = vadd.f32 %v2179_v2, %v2126_v4  ;;  %v2243_v11 = vadd.f32 %v2236_v0, %v2184_v5 }
 0x5da   : > { %v2181_v6 = vpop.f32.mrf.mxu1  ;;  %v2240_v7 = vpop.f32.mrf.mxu0 }
 0x5db   : > { %v2244_v13 = vadd.f32 %v2238_v3, %v2185_v8 }
 0x5dc   : > { %v2182_v9 = vpop.f32.mrf.mxu1  ;;  %v2241_v10 = vpop.f32.mrf.mxu0 }
 0x5de   : > { %v2295_v12 = vpop.f32.mrf.mxu1 }
 0x5df   : > { %v2302_v14 = vadd.f32 %v2295_v12, %v2243_v11 }
 0x5e0   : > { %v2297_v19 = vpop.f32.mrf.mxu1 }
 0x5e1   : > { %v2310_v20 = vmul.f32 %v2308_v18, %v2302_v14  ;;  %v2303_v21 = vadd.f32 %v2297_v19, %v2244_v13 }
 0x5e2   : > { %v2299_v15 = vpop.f32.mrf.mxu1 }
 0x5e3   : > { %v2318_v17 = vadd.f32 %v2316_v22, %v2310_v20  ;;  %v2311_v24 = vmul.f32 %v2308_v18, %v2303_v21 }
 0x5e4   : > { %v2300_v25 = vpop.f32.mrf.mxu1 }
 0x5e5   : > { %v2320_v16 = vmax.f32 %v2318_v17, 0.0  ;;  %v2319_v23 = vadd.f32 %v2316_v22, %v2311_v24 }
 0x5e7   : > { %v2321_v26 = vmax.f32 %v2319_v23, 0.0  ;;  %v2322_v27 = vmul.f32 %v2320_v16, %v3064_v32 }
 0x5e9   : > { %v2323_v28 = vmul.f32 %v2321_v26, %v3066_v35 }
 0x5eb   : > { %v2326_v29 = vcombine.low %v2322_v27, %v2323_v28 }
 0x5ed   : > { %2327 = vrot.lane.b32.xlu0 %v2326_v29, %s3234_s13  ;;  %s2337_s13 = scalar_lea.sflag [#allocation3], %s392_s12 }
 0x65f   : > { %v2328_v30 = vpop.permute.xlu0 %2327 }
 0x660   : > { %v2329_v31 = vrot.slane %v2328_v30, 4 }
 0x662   : > { %v2331_v32 = vsel %vm1384_vm5, %v2328_v30, %v2329_v31 }
 0x663   : > { %2335 = vst.msk [vmem:[%s394_s15] sm:$0xff] %vm2334_vm9, %v2331_v32 }
 0x664   : > { %2646 = shalt.err (!%p2643_p3)
}
 0x665   : > { %s2647_s22 = scalar_lea.hbm %s3175_s25, 128  ;;  %s2651_s29 = scalar_lea.hbm %s3222_s11, 256 }
 0x666   : > { %p2648_p4 = scmp.ne.s32.totalorder %s3175_s25, %s2647_s22  ;;  %p2652_p9 = scmp.lt.s32.totalorder %s3175_s25, %s3222_s11 }
 0x667   : > { %p2653_p10 = scmp.lt.s32.totalorder %s2651_s29, %s2647_s22 }
 0x668   : > { %p2649_p7 = pnand %p2648_p4, %p2810_p5 }
 0x669   : > { %p2654_p11 = por %p2653_p10, %p2652_p9 }
 0x66a   : > { %p2650_p8 = pneg %p2649_p7 }
 0x66c   : > { %p2655_p12 = pnand %p2654_p11, %p2650_p8 }
 0x66e   : > { %2658 = shalt.err (!%p2655_p12)
}
 0x66f   : > { %2575 = dma.vmem_to_hbm [thread:$0]  (%p2810_p5), %s2352_s16, 128, %s3175_s25, %s2337_s13  }
 0x670 PF: > { %p2581_p13 = scmp.ge.s32.totalorder %s2693_s20, 2  ;;  %s2363_s0 = sand.u32 1, %s2681_s17  }
 0x671   : > { %s2364_s24 = scalar_lea.sflag [#allocation3], %s2363_s0 }
 0x672   : > { %p2578_p0 = pnand %p2581_p13, %p2814_p6 }
 0x674   : > { %p2579_p1 = pneg %p2578_p0 }
 0x676   : > { %2676 = dma.done.wait (%p2579_p1), %s2364_s24, 128  }
 0x677   : > { %2678 = vsyncadd (%p2579_p1), %s2364_s24, 4294967168  ;;  %p21_p2 = scmp.ge.s32.totalorder %s2797_s23, 4   ;;  %s3236_s17 = smov %s2685_s18 }
 0x678   : > { %s3237_s18 = smov %s2689_s19  ;;  %s3238_s19 = smov %s2808_s26 }
 0x679   : > { %s3239_s20 = smov %s2797_s23  ;;  %23 = sbr.rel (!%p21_p2) target bundleno = 5 (0x5), region = 118 }
 0x67e   :  { %2369 = vsyncpa [#allocation3], 1 }
 0x67f   :  { %2371 = vsyncpa [#allocation3 + $0x1], 1 }

</bundles_post_ra>
